<compile_context>
chip_gen: v7x
topology: tpu7x:2x2x1
jax: 0.10.0
libtpu: 0.0.40
codegen_flags: <defaults>
</compile_context>

<pallas_src>
import math

import jax
import jax.numpy as jnp
import numpy as np
from jax.experimental import pallas as pl
from jax.experimental.pallas import tpu as pltpu


_VMEM = pl.BlockSpec(memory_space=pltpu.MemorySpace.VMEM)


# ----------------------------------------------------------------------------
# Fused kernel: all bidirectional LSTM layers + final Linear, one invocation
# ----------------------------------------------------------------------------
def make_lstm_fused_kernel(T, B, H, layer_in_dims):
    num_layers = len(layer_in_dims)
    H2, H8 = 2 * H, 8 * H

    def kernel(*refs):
        x_ref = refs[0]                                   # (T*B, Din0) time-major
        layer_refs = [(refs[1 + 3 * l], refs[2 + 3 * l], refs[3 + 3 * l])
                      for l in range(num_layers)]
        w_fc_ref = refs[1 + 3 * num_layers]               # (1, 2H)
        b_fc_ref = refs[2 + 3 * num_layers]               # (1, 1)
        out_ref = refs[3 + 3 * num_layers]                # (B, 1)
        act_scr = refs[4 + 3 * num_layers]                # (T*B, 2H) inter-layer act
        xproj_scr = refs[5 + 3 * num_layers]              # (T, 2B, 8H) hoisted x-proj

        h_f_last = None
        h_b_last = None

        for li, (w_ih_ref, w_hh_ref, b_ref) in enumerate(layer_refs):
            is_last = li == num_layers - 1
            x_flat = x_ref[...] if li == 0 else act_scr[...]      # (T*B, Din_l)

            # ---- Hoisted input projection: one MXU matmul covering all T steps
            # and both directions, bias folded in; reorganized so that step s
            # directly reads [fwd x-proj at time s ; bwd x-proj at time T-1-s].
            proj = (jnp.dot(x_flat, w_ih_ref[...],
                            preferred_element_type=jnp.float32)
                    + b_ref[...])                                  # (T*B, 16H)
            for t in range(T):
                rows = proj[t * B:(t + 1) * B, :]
                xproj_scr[t, 0:B, :] = rows[:, :H8]                # forward, step t
                xproj_scr[T - 1 - t, B:2 * B, :] = rows[:, H8:]    # backward, step T-1-t

            whh = w_hh_ref[...]                                    # (2H, 8H) block-diag
            h_pad = jnp.zeros((2 * B, H2), jnp.float32)            # fwd: lanes 0:H
            c_pad = jnp.zeros((2 * B, H2), jnp.float32)            # bwd: lanes H:2H

            # ---- Serial recurrence (fully unrolled, T is small & static).
            # Per step: one small MXU dot + lane-aligned elementwise updates;
            # no slicing/re-concat of the matmul result, no per-step masking.
            for t in range(T):
                gates = xproj_scr[t] + jnp.dot(
                    h_pad, whh, preferred_element_type=jnp.float32)     # (2B, 8H)
                sg = jax.nn.sigmoid(gates)        # one EUP chain over whole block
                th = jnp.tanh(gates)              # one EUP chain over whole block
                i_g = sg[:, 0 * H2:1 * H2]
                f_g = sg[:, 1 * H2:2 * H2]
                g_g = th[:, 2 * H2:3 * H2]
                o_g = sg[:, 3 * H2:4 * H2]
                c_pad = f_g * c_pad + i_g * g_g   # padding lanes stay exactly 0
                h_pad = o_g * jnp.tanh(c_pad)

                if not is_last:
                    rt = T - 1 - t
                    # forward hidden of time t  -> lanes 0:H of row block t
                    act_scr[t * B:(t + 1) * B, 0:H] = h_pad[0:B, 0:H]
                    # backward hidden of time rt -> lanes H:2H of row block rt
                    act_scr[rt * B:(rt + 1) * B, H:H2] = h_pad[B:2 * B, H:H2]
                elif t == 0:
                    # backward hidden for original time T-1 (padded: zeros in 0:H)
                    h_b_last = h_pad[B:2 * B, :]

            if is_last:
                h_f_last = h_pad[0:B, :]          # padded: zeros in H:2H

        # out[:, -1, :] = [h_f(T-1) | h_b(T-1)]; the two padded halves are
        # complementary, so a single add realizes the concat.
        last = h_f_last + h_b_last                                 # (B, 2H)
        # Dropout is identity in eval; Linear(2H -> 1) as multiply + lane reduce
        # (N=1 would waste the MXU).
        out_ref[...] = (jnp.sum(last * w_fc_ref[...], axis=-1, keepdims=True)
                        + b_fc_ref[...])
        # TODO(synk): training-mode dropout (inter-layer LSTM dropout and the
        # dropout before fc) is omitted - eval semantics only.

    return kernel


def lstm_forward(x, packed_layers, fc_params):
    """x: (B, T, input_size) batch-first -> (B, 1)."""
    B, T, Din0 = x.shape
    w_fc, b_fc = fc_params
    H = w_fc.shape[1] // 2
    # time-major, flattened to (T*B, Din) so the in-kernel input projection is
    # one lane-dense matmul with no in-kernel reshapes.
    x_tm = jnp.transpose(x, (1, 0, 2)).astype(jnp.float32).reshape(T * B, Din0)

    inputs = [x_tm]
    layer_in_dims = []
    for w_ih_p, w_hh_p, b_p in packed_layers:
        inputs += [w_ih_p, w_hh_p, b_p]
        layer_in_dims.append(w_ih_p.shape[0])
    inputs += [w_fc, b_fc]

    kernel = make_lstm_fused_kernel(T, B, H, tuple(layer_in_dims))
    return pl.pallas_call(
        kernel,
        out_shape=jax.ShapeDtypeStruct((B, 1), jnp.float32),
        in_specs=[_VMEM] * len(inputs),
        out_specs=_VMEM,
        scratch_shapes=[
            pltpu.VMEM((T * B, 2 * H), jnp.float32),      # inter-layer activations
            pltpu.VMEM((T, 2 * B, 8 * H), jnp.float32),   # hoisted input projections
        ],
    )(*inputs)


# ----------------------------------------------------------------------------
# Parameter init (PyTorch-style) + packing into the kernel's padded layout
# ----------------------------------------------------------------------------
def init_params(key, input_size, hidden_size, num_layers):
    """uniform(-1/sqrt(H), 1/sqrt(H)); natural per-direction layouts."""
    H = hidden_size
    stdv = 1.0 / math.sqrt(H)
    layers = []
    for layer in range(num_layers):
        in_dim = input_size if layer == 0 else 2 * H
        dirs = []
        for _ in range(2):
            key, k1, k2, k3, k4 = jax.random.split(key, 5)
            w_ih = jax.random.uniform(k1, (in_dim, 4 * H), jnp.float32, -stdv, stdv)
            w_hh = jax.random.uniform(k2, (H, 4 * H), jnp.float32, -stdv, stdv)
            b_ih = jax.random.uniform(k3, (4 * H,), jnp.float32, -stdv, stdv)
            b_hh = jax.random.uniform(k4, (4 * H,), jnp.float32, -stdv, stdv)
            dirs.append((w_ih, w_hh, b_ih + b_hh))
        layers.append(tuple(dirs))
    key, kf1, kf2 = jax.random.split(key, 3)
    fc_stdv = 1.0 / math.sqrt(2 * H)
    w_fc = jax.random.uniform(kf1, (1, 2 * H), jnp.float32, -fc_stdv, fc_stdv)
    b_fc = jax.random.uniform(kf2, (1, 1), jnp.float32, -fc_stdv, fc_stdv)
    return layers, (w_fc, b_fc)


def pack_layer(dirs, H):
    """Pack one bidirectional layer into the kernel's lane-aligned layout.

    w_ih_p (Din, 16H): columns = [fwd-proj 8H | bwd-proj 8H]; inside each 8H
        block, gate g (i,f,g,o) occupies lanes [2Hg, 2H(g+1)); forward values
        in the first H lanes, backward values in the last H lanes, rest zero.
    w_hh_p (2H, 8H):   block-diagonal recurrent weights in the same gate layout
        (rows 0:H = forward hidden, rows H:2H = backward hidden).
    b_p    (1, 16H):   combined b_ih + b_hh, same column layout as w_ih_p.
    """
    (w_ih_f, w_hh_f, b_f), (w_ih_b, w_hh_b, b_b) = dirs
    din = w_ih_f.shape[0]
    w_ih_p = np.zeros((din, 16 * H), np.float32)
    w_hh_p = np.zeros((2 * H, 8 * H), np.float32)
    b_p = np.zeros((1, 16 * H), np.float32)
    for g in range(4):
        nat = slice(g * H, (g + 1) * H)
        fwd_col = slice(2 * H * g, 2 * H * g + H)
        bwd_col = slice(2 * H * g + H, 2 * H * (g + 1))
        bwd_half_col = slice(8 * H + 2 * H * g + H, 8 * H + 2 * H * (g + 1))
        # forward direction -> first 8H columns, forward sub-lanes
        w_ih_p[:, fwd_col] = np.asarray(w_ih_f[:, nat])
        b_p[0, fwd_col] = np.asarray(b_f[nat])
        w_hh_p[:H, fwd_col] = np.asarray(w_hh_f[:, nat])
        # backward direction -> last 8H columns, backward sub-lanes
        w_ih_p[:, bwd_half_col] = np.asarray(w_ih_b[:, nat])
        b_p[0, bwd_half_col] = np.asarray(b_b[nat])
        w_hh_p[H:, bwd_col] = np.asarray(w_hh_b[:, nat])
    return jnp.asarray(w_ih_p), jnp.asarray(w_hh_p), jnp.asarray(b_p)


# ----------------------------------------------------------------------------
# Pure-JAX reference (natural weights) for the correctness check
# ----------------------------------------------------------------------------
def _ref_dir(x_tm, w_ih, w_hh, b):
    T, B, _ = x_tm.shape
    H = w_hh.shape[0]

    def step(carry, x_t):
        hh, cc = carry
        gates = x_t @ w_ih + hh @ w_hh + b
        i = jax.nn.sigmoid(gates[:, :H])
        f = jax.nn.sigmoid(gates[:, H:2 * H])
        g = jnp.tanh(gates[:, 2 * H:3 * H])
        o = jax.nn.sigmoid(gates[:, 3 * H:])
        cc = f * cc + i * g
        hh = o * jnp.tanh(cc)
        return (hh, cc), hh

    init = (jnp.zeros((B, H), jnp.float32), jnp.zeros((B, H), jnp.float32))
    _, outs = jax.lax.scan(step, init, x_tm)
    return outs


def ref_forward(x, layers, fc_params):
    h = jnp.transpose(x, (1, 0, 2)).astype(jnp.float32)
    for f_par, b_par in layers:
        out_f = _ref_dir(h, *f_par)
        out_b = _ref_dir(h[::-1], *b_par)[::-1]
        h = jnp.concatenate([out_f, out_b], axis=-1)
    w_fc, b_fc = fc_params
    return h[-1] @ w_fc.T + b_fc


# ----------------------------------------------------------------------------
if __name__ == "__main__":
    input_size = 4
    hidden_size = 32
    num_layers = 2
    batch = 2
    seq = 8

    key = jax.random.PRNGKey(0)
    key, kx, kp = jax.random.split(key, 3)
    x = jax.random.normal(kx, (batch, seq, input_size), jnp.float32)
    layers, fc_params = init_params(kp, input_size, hidden_size, num_layers)

    packed = [pack_layer(d, hidden_size) for d in layers]
    out = jax.block_until_ready(lstm_forward(x, packed, fc_params))

    ref = jax.block_until_ready(ref_forward(x, layers, fc_params))
    np.testing.assert_allclose(np.asarray(out), np.asarray(ref),
                               rtol=2e-5, atol=2e-5)
    assert out.shape == (batch, 1)
    print("KERNEL_OK")
</pallas_src>

<mosaic_0001>
module attributes {stable_mosaic.version = 11 : i64} {
  func.func @kernel(%arg0: memref<16x4xf32, #tpu.memory_space<vmem>>, %arg1: memref<4x512xf32, #tpu.memory_space<vmem>>, %arg2: memref<64x256xf32, #tpu.memory_space<vmem>>, %arg3: memref<1x512xf32, #tpu.memory_space<vmem>>, %arg4: memref<64x512xf32, #tpu.memory_space<vmem>>, %arg5: memref<64x256xf32, #tpu.memory_space<vmem>>, %arg6: memref<1x512xf32, #tpu.memory_space<vmem>>, %arg7: memref<1x64xf32, #tpu.memory_space<vmem>>, %arg8: memref<1x1xf32, #tpu.memory_space<vmem>>, %arg9: memref<2x1xf32, #tpu.memory_space<vmem>>, %arg10: memref<16x64xf32, #tpu.memory_space<vmem>>, %arg11: memref<8x4x256xf32, #tpu.memory_space<vmem>>) attributes {dimension_semantics = [], scalar_prefetch = 0 : i64, scratch_operands = 2 : i64, tpu.core_type = #tpu.core_type<tc>} {
    %c0 = arith.constant 0 : index
    %c0_0 = arith.constant 0 : index
    %0 = vector.load %arg0[%c0, %c0_0] : memref<16x4xf32, #tpu.memory_space<vmem>>, vector<16x4xf32>
    %c0_1 = arith.constant 0 : index
    %c0_2 = arith.constant 0 : index
    %1 = vector.load %arg1[%c0_1, %c0_2] : memref<4x512xf32, #tpu.memory_space<vmem>>, vector<4x512xf32>
    %cst = arith.constant dense<0.000000e+00> : vector<16x512xf32>
    %2 = tpu.matmul %0, %1, %cst {dimension_numbers = #tpu.dot_dimension_numbers<[1], [0], [0], [1], [0, 0, 1, 1], [], []>} : vector<16x4xf32>, vector<4x512xf32>, vector<16x512xf32> -> vector<16x512xf32>
    %c0_3 = arith.constant 0 : index
    %c0_4 = arith.constant 0 : index
    %3 = vector.load %arg3[%c0_3, %c0_4] : memref<1x512xf32, #tpu.memory_space<vmem>>, vector<1x512xf32>
    %4 = vector.broadcast %3 : vector<1x512xf32> to vector<16x512xf32>
    %5 = arith.addf %2, %4 : vector<16x512xf32>
    %6 = vector.extract_strided_slice %5 {offsets = [0, 0], sizes = [2, 512], strides = [1, 1]} : vector<16x512xf32> to vector<2x512xf32>
    %7 = vector.extract_strided_slice %6 {offsets = [0, 0], sizes = [2, 256], strides = [1, 1]} : vector<2x512xf32> to vector<2x256xf32>
    %c0_5 = arith.constant 0 : index
    %c0_6 = arith.constant 0 : index
    %c0_7 = arith.constant 0 : index
    %8 = vector.load %arg11[%c0_5, %c0_6, %c0_7] : memref<8x4x256xf32, #tpu.memory_space<vmem>>, vector<1x2x256xf32>
    %9 = vector.shape_cast %8 : vector<1x2x256xf32> to vector<2x256xf32>
    %10 = vector.shape_cast %7 : vector<2x256xf32> to vector<1x2x256xf32>
    tpu.vector_store %arg11[%c0_5, %c0_6, %c0_7], %10 {strides = array<i32>} : memref<8x4x256xf32, #tpu.memory_space<vmem>>, vector<1x2x256xf32>,
    %11 = vector.extract_strided_slice %6 {offsets = [0, 256], sizes = [2, 256], strides = [1, 1]} : vector<2x512xf32> to vector<2x256xf32>
    %c7 = arith.constant 7 : index
    %c2 = arith.constant 2 : index
    %c0_8 = arith.constant 0 : index
    %12 = vector.load %arg11[%c7, %c2, %c0_8] : memref<8x4x256xf32, #tpu.memory_space<vmem>>, vector<1x2x256xf32>
    %13 = vector.shape_cast %12 : vector<1x2x256xf32> to vector<2x256xf32>
    %14 = vector.shape_cast %11 : vector<2x256xf32> to vector<1x2x256xf32>
    tpu.vector_store %arg11[%c7, %c2, %c0_8], %14 {strides = array<i32>} : memref<8x4x256xf32, #tpu.memory_space<vmem>>, vector<1x2x256xf32>,
    %15 = vector.extract_strided_slice %5 {offsets = [2, 0], sizes = [2, 512], strides = [1, 1]} : vector<16x512xf32> to vector<2x512xf32>
    %16 = vector.extract_strided_slice %15 {offsets = [0, 0], sizes = [2, 256], strides = [1, 1]} : vector<2x512xf32> to vector<2x256xf32>
    %c1 = arith.constant 1 : index
    %c0_9 = arith.constant 0 : index
    %c0_10 = arith.constant 0 : index
    %17 = vector.load %arg11[%c1, %c0_9, %c0_10] : memref<8x4x256xf32, #tpu.memory_space<vmem>>, vector<1x2x256xf32>
    %18 = vector.shape_cast %17 : vector<1x2x256xf32> to vector<2x256xf32>
    %19 = vector.shape_cast %16 : vector<2x256xf32> to vector<1x2x256xf32>
    tpu.vector_store %arg11[%c1, %c0_9, %c0_10], %19 {strides = array<i32>} : memref<8x4x256xf32, #tpu.memory_space<vmem>>, vector<1x2x256xf32>,
    %20 = vector.extract_strided_slice %15 {offsets = [0, 256], sizes = [2, 256], strides = [1, 1]} : vector<2x512xf32> to vector<2x256xf32>
    %c6 = arith.constant 6 : index
    %c2_11 = arith.constant 2 : index
    %c0_12 = arith.constant 0 : index
    %21 = vector.load %arg11[%c6, %c2_11, %c0_12] : memref<8x4x256xf32, #tpu.memory_space<vmem>>, vector<1x2x256xf32>
    %22 = vector.shape_cast %21 : vector<1x2x256xf32> to vector<2x256xf32>
    %23 = vector.shape_cast %20 : vector<2x256xf32> to vector<1x2x256xf32>
    tpu.vector_store %arg11[%c6, %c2_11, %c0_12], %23 {strides = array<i32>} : memref<8x4x256xf32, #tpu.memory_space<vmem>>, vector<1x2x256xf32>,
    %24 = vector.extract_strided_slice %5 {offsets = [4, 0], sizes = [2, 512], strides = [1, 1]} : vector<16x512xf32> to vector<2x512xf32>
    %25 = vector.extract_strided_slice %24 {offsets = [0, 0], sizes = [2, 256], strides = [1, 1]} : vector<2x512xf32> to vector<2x256xf32>
    %c2_13 = arith.constant 2 : index
    %c0_14 = arith.constant 0 : index
    %c0_15 = arith.constant 0 : index
    %26 = vector.load %arg11[%c2_13, %c0_14, %c0_15] : memref<8x4x256xf32, #tpu.memory_space<vmem>>, vector<1x2x256xf32>
    %27 = vector.shape_cast %26 : vector<1x2x256xf32> to vector<2x256xf32>
    %28 = vector.shape_cast %25 : vector<2x256xf32> to vector<1x2x256xf32>
    tpu.vector_store %arg11[%c2_13, %c0_14, %c0_15], %28 {strides = array<i32>} : memref<8x4x256xf32, #tpu.memory_space<vmem>>, vector<1x2x256xf32>,
    %29 = vector.extract_strided_slice %24 {offsets = [0, 256], sizes = [2, 256], strides = [1, 1]} : vector<2x512xf32> to vector<2x256xf32>
    %c5 = arith.constant 5 : index
    %c2_16 = arith.constant 2 : index
    %c0_17 = arith.constant 0 : index
    %30 = vector.load %arg11[%c5, %c2_16, %c0_17] : memref<8x4x256xf32, #tpu.memory_space<vmem>>, vector<1x2x256xf32>
    %31 = vector.shape_cast %30 : vector<1x2x256xf32> to vector<2x256xf32>
    %32 = vector.shape_cast %29 : vector<2x256xf32> to vector<1x2x256xf32>
    tpu.vector_store %arg11[%c5, %c2_16, %c0_17], %32 {strides = array<i32>} : memref<8x4x256xf32, #tpu.memory_space<vmem>>, vector<1x2x256xf32>,
    %33 = vector.extract_strided_slice %5 {offsets = [6, 0], sizes = [2, 512], strides = [1, 1]} : vector<16x512xf32> to vector<2x512xf32>
    %34 = vector.extract_strided_slice %33 {offsets = [0, 0], sizes = [2, 256], strides = [1, 1]} : vector<2x512xf32> to vector<2x256xf32>
    %c3 = arith.constant 3 : index
    %c0_18 = arith.constant 0 : index
    %c0_19 = arith.constant 0 : index
    %35 = vector.load %arg11[%c3, %c0_18, %c0_19] : memref<8x4x256xf32, #tpu.memory_space<vmem>>, vector<1x2x256xf32>
    %36 = vector.shape_cast %35 : vector<1x2x256xf32> to vector<2x256xf32>
    %37 = vector.shape_cast %34 : vector<2x256xf32> to vector<1x2x256xf32>
    tpu.vector_store %arg11[%c3, %c0_18, %c0_19], %37 {strides = array<i32>} : memref<8x4x256xf32, #tpu.memory_space<vmem>>, vector<1x2x256xf32>,
    %38 = vector.extract_strided_slice %33 {offsets = [0, 256], sizes = [2, 256], strides = [1, 1]} : vector<2x512xf32> to vector<2x256xf32>
    %c4 = arith.constant 4 : index
    %c2_20 = arith.constant 2 : index
    %c0_21 = arith.constant 0 : index
    %39 = vector.load %arg11[%c4, %c2_20, %c0_21] : memref<8x4x256xf32, #tpu.memory_space<vmem>>, vector<1x2x256xf32>
    %40 = vector.shape_cast %39 : vector<1x2x256xf32> to vector<2x256xf32>
    %41 = vector.shape_cast %38 : vector<2x256xf32> to vector<1x2x256xf32>
    tpu.vector_store %arg11[%c4, %c2_20, %c0_21], %41 {strides = array<i32>} : memref<8x4x256xf32, #tpu.memory_space<vmem>>, vector<1x2x256xf32>,
    %42 = vector.extract_strided_slice %5 {offsets = [8, 0], sizes = [2, 512], strides = [1, 1]} : vector<16x512xf32> to vector<2x512xf32>
    %43 = vector.extract_strided_slice %42 {offsets = [0, 0], sizes = [2, 256], strides = [1, 1]} : vector<2x512xf32> to vector<2x256xf32>
    %c4_22 = arith.constant 4 : index
    %c0_23 = arith.constant 0 : index
    %c0_24 = arith.constant 0 : index
    %44 = vector.load %arg11[%c4_22, %c0_23, %c0_24] : memref<8x4x256xf32, #tpu.memory_space<vmem>>, vector<1x2x256xf32>
    %45 = vector.shape_cast %44 : vector<1x2x256xf32> to vector<2x256xf32>
    %46 = vector.shape_cast %43 : vector<2x256xf32> to vector<1x2x256xf32>
    tpu.vector_store %arg11[%c4_22, %c0_23, %c0_24], %46 {strides = array<i32>} : memref<8x4x256xf32, #tpu.memory_space<vmem>>, vector<1x2x256xf32>,
    %47 = vector.extract_strided_slice %42 {offsets = [0, 256], sizes = [2, 256], strides = [1, 1]} : vector<2x512xf32> to vector<2x256xf32>
    %c3_25 = arith.constant 3 : index
    %c2_26 = arith.constant 2 : index
    %c0_27 = arith.constant 0 : index
    %48 = vector.load %arg11[%c3_25, %c2_26, %c0_27] : memref<8x4x256xf32, #tpu.memory_space<vmem>>, vector<1x2x256xf32>
    %49 = vector.shape_cast %48 : vector<1x2x256xf32> to vector<2x256xf32>
    %50 = vector.shape_cast %47 : vector<2x256xf32> to vector<1x2x256xf32>
    tpu.vector_store %arg11[%c3_25, %c2_26, %c0_27], %50 {strides = array<i32>} : memref<8x4x256xf32, #tpu.memory_space<vmem>>, vector<1x2x256xf32>,
    %51 = vector.extract_strided_slice %5 {offsets = [10, 0], sizes = [2, 512], strides = [1, 1]} : vector<16x512xf32> to vector<2x512xf32>
    %52 = vector.extract_strided_slice %51 {offsets = [0, 0], sizes = [2, 256], strides = [1, 1]} : vector<2x512xf32> to vector<2x256xf32>
    %c5_28 = arith.constant 5 : index
    %c0_29 = arith.constant 0 : index
    %c0_30 = arith.constant 0 : index
    %53 = vector.load %arg11[%c5_28, %c0_29, %c0_30] : memref<8x4x256xf32, #tpu.memory_space<vmem>>, vector<1x2x256xf32>
    %54 = vector.shape_cast %53 : vector<1x2x256xf32> to vector<2x256xf32>
    %55 = vector.shape_cast %52 : vector<2x256xf32> to vector<1x2x256xf32>
    tpu.vector_store %arg11[%c5_28, %c0_29, %c0_30], %55 {strides = array<i32>} : memref<8x4x256xf32, #tpu.memory_space<vmem>>, vector<1x2x256xf32>,
    %56 = vector.extract_strided_slice %51 {offsets = [0, 256], sizes = [2, 256], strides = [1, 1]} : vector<2x512xf32> to vector<2x256xf32>
    %c2_31 = arith.constant 2 : index
    %c2_32 = arith.constant 2 : index
    %c0_33 = arith.constant 0 : index
    %57 = vector.load %arg11[%c2_31, %c2_32, %c0_33] : memref<8x4x256xf32, #tpu.memory_space<vmem>>, vector<1x2x256xf32>
    %58 = vector.shape_cast %57 : vector<1x2x256xf32> to vector<2x256xf32>
    %59 = vector.shape_cast %56 : vector<2x256xf32> to vector<1x2x256xf32>
    tpu.vector_store %arg11[%c2_31, %c2_32, %c0_33], %59 {strides = array<i32>} : memref<8x4x256xf32, #tpu.memory_space<vmem>>, vector<1x2x256xf32>,
    %60 = vector.extract_strided_slice %5 {offsets = [12, 0], sizes = [2, 512], strides = [1, 1]} : vector<16x512xf32> to vector<2x512xf32>
    %61 = vector.extract_strided_slice %60 {offsets = [0, 0], sizes = [2, 256], strides = [1, 1]} : vector<2x512xf32> to vector<2x256xf32>
    %c6_34 = arith.constant 6 : index
    %c0_35 = arith.constant 0 : index
    %c0_36 = arith.constant 0 : index
    %62 = vector.load %arg11[%c6_34, %c0_35, %c0_36] : memref<8x4x256xf32, #tpu.memory_space<vmem>>, vector<1x2x256xf32>
    %63 = vector.shape_cast %62 : vector<1x2x256xf32> to vector<2x256xf32>
    %64 = vector.shape_cast %61 : vector<2x256xf32> to vector<1x2x256xf32>
    tpu.vector_store %arg11[%c6_34, %c0_35, %c0_36], %64 {strides = array<i32>} : memref<8x4x256xf32, #tpu.memory_space<vmem>>, vector<1x2x256xf32>,
    %65 = vector.extract_strided_slice %60 {offsets = [0, 256], sizes = [2, 256], strides = [1, 1]} : vector<2x512xf32> to vector<2x256xf32>
    %c1_37 = arith.constant 1 : index
    %c2_38 = arith.constant 2 : index
    %c0_39 = arith.constant 0 : index
    %66 = vector.load %arg11[%c1_37, %c2_38, %c0_39] : memref<8x4x256xf32, #tpu.memory_space<vmem>>, vector<1x2x256xf32>
    %67 = vector.shape_cast %66 : vector<1x2x256xf32> to vector<2x256xf32>
    %68 = vector.shape_cast %65 : vector<2x256xf32> to vector<1x2x256xf32>
    tpu.vector_store %arg11[%c1_37, %c2_38, %c0_39], %68 {strides = array<i32>} : memref<8x4x256xf32, #tpu.memory_space<vmem>>, vector<1x2x256xf32>,
    %69 = vector.extract_strided_slice %5 {offsets = [14, 0], sizes = [2, 512], strides = [1, 1]} : vector<16x512xf32> to vector<2x512xf32>
    %70 = vector.extract_strided_slice %69 {offsets = [0, 0], sizes = [2, 256], strides = [1, 1]} : vector<2x512xf32> to vector<2x256xf32>
    %c7_40 = arith.constant 7 : index
    %c0_41 = arith.constant 0 : index
    %c0_42 = arith.constant 0 : index
    %71 = vector.load %arg11[%c7_40, %c0_41, %c0_42] : memref<8x4x256xf32, #tpu.memory_space<vmem>>, vector<1x2x256xf32>
    %72 = vector.shape_cast %71 : vector<1x2x256xf32> to vector<2x256xf32>
    %73 = vector.shape_cast %70 : vector<2x256xf32> to vector<1x2x256xf32>
    tpu.vector_store %arg11[%c7_40, %c0_41, %c0_42], %73 {strides = array<i32>} : memref<8x4x256xf32, #tpu.memory_space<vmem>>, vector<1x2x256xf32>,
    %74 = vector.extract_strided_slice %69 {offsets = [0, 256], sizes = [2, 256], strides = [1, 1]} : vector<2x512xf32> to vector<2x256xf32>
    %c0_43 = arith.constant 0 : index
    %c2_44 = arith.constant 2 : index
    %c0_45 = arith.constant 0 : index
    %75 = vector.load %arg11[%c0_43, %c2_44, %c0_45] : memref<8x4x256xf32, #tpu.memory_space<vmem>>, vector<1x2x256xf32>
    %76 = vector.shape_cast %75 : vector<1x2x256xf32> to vector<2x256xf32>
    %77 = vector.shape_cast %74 : vector<2x256xf32> to vector<1x2x256xf32>
    tpu.vector_store %arg11[%c0_43, %c2_44, %c0_45], %77 {strides = array<i32>} : memref<8x4x256xf32, #tpu.memory_space<vmem>>, vector<1x2x256xf32>,
    %c0_46 = arith.constant 0 : index
    %c0_47 = arith.constant 0 : index
    %78 = vector.load %arg2[%c0_46, %c0_47] : memref<64x256xf32, #tpu.memory_space<vmem>>, vector<64x256xf32>
    %cst_48 = arith.constant 0.000000e+00 : f32
    %79 = vector.broadcast %cst_48 : f32 to vector<4x64xf32>
    %cst_49 = arith.constant 0.000000e+00 : f32
    %80 = vector.broadcast %cst_49 : f32 to vector<4x64xf32>
    %c0_50 = arith.constant 0 : index
    %c0_51 = arith.constant 0 : index
    %c0_52 = arith.constant 0 : index
    %81 = vector.load %arg11[%c0_50, %c0_51, %c0_52] : memref<8x4x256xf32, #tpu.memory_space<vmem>>, vector<1x4x256xf32>
    %82 = vector.shape_cast %81 : vector<1x4x256xf32> to vector<4x256xf32>
    %cst_53 = arith.constant dense<0.000000e+00> : vector<4x256xf32>
    %83 = tpu.matmul %79, %78, %cst_53 {dimension_numbers = #tpu.dot_dimension_numbers<[1], [0], [0], [1], [0, 0, 1, 1], [], []>} : vector<4x64xf32>, vector<64x256xf32>, vector<4x256xf32> -> vector<4x256xf32>
    %84 = arith.addf %82, %83 : vector<4x256xf32>
    %85 = arith.negf %84 : vector<4x256xf32>
    %86 = math.exp %85 : vector<4x256xf32>
    %cst_54 = arith.constant 1.000000e+00 : f32
    %87 = vector.broadcast %cst_54 : f32 to vector<4x256xf32>
    %88 = arith.addf %87, %86 : vector<4x256xf32>
    %89 = arith.divf %87, %88 : vector<4x256xf32>
    %90 = math.tanh %84 : vector<4x256xf32>
    %91 = vector.extract_strided_slice %89 {offsets = [0, 0], sizes = [4, 64], strides = [1, 1]} : vector<4x256xf32> to vector<4x64xf32>
    %92 = vector.extract_strided_slice %89 {offsets = [0, 64], sizes = [4, 64], strides = [1, 1]} : vector<4x256xf32> to vector<4x64xf32>
    %93 = vector.extract_strided_slice %90 {offsets = [0, 128], sizes = [4, 64], strides = [1, 1]} : vector<4x256xf32> to vector<4x64xf32>
    %94 = vector.extract_strided_slice %89 {offsets = [0, 192], sizes = [4, 64], strides = [1, 1]} : vector<4x256xf32> to vector<4x64xf32>
    %95 = arith.mulf %92, %80 : vector<4x64xf32>
    %96 = arith.mulf %91, %93 : vector<4x64xf32>
    %97 = arith.addf %95, %96 : vector<4x64xf32>
    %98 = math.tanh %97 : vector<4x64xf32>
    %99 = arith.mulf %94, %98 : vector<4x64xf32>
    %100 = vector.extract_strided_slice %99 {offsets = [0, 0], sizes = [2, 32], strides = [1, 1]} : vector<4x64xf32> to vector<2x32xf32>
    %c0_55 = arith.constant 0 : index
    %c0_56 = arith.constant 0 : index
    %101 = vector.load %arg10[%c0_55, %c0_56] : memref<16x64xf32, #tpu.memory_space<vmem>>, vector<2x32xf32>
    tpu.vector_store %arg10[%c0_55, %c0_56], %100 {strides = array<i32>} : memref<16x64xf32, #tpu.memory_space<vmem>>, vector<2x32xf32>,
    %102 = vector.extract_strided_slice %99 {offsets = [2, 32], sizes = [2, 32], strides = [1, 1]} : vector<4x64xf32> to vector<2x32xf32>
    %c14 = arith.constant 14 : index
    %c32 = arith.constant 32 : index
    %103 = vector.load %arg10[%c14, %c32] : memref<16x64xf32, #tpu.memory_space<vmem>>, vector<2x32xf32>
    tpu.vector_store %arg10[%c14, %c32], %102 {strides = array<i32>} : memref<16x64xf32, #tpu.memory_space<vmem>>, vector<2x32xf32>,
    %c1_57 = arith.constant 1 : index
    %c0_58 = arith.constant 0 : index
    %c0_59 = arith.constant 0 : index
    %104 = vector.load %arg11[%c1_57, %c0_58, %c0_59] : memref<8x4x256xf32, #tpu.memory_space<vmem>>, vector<1x4x256xf32>
    %105 = vector.shape_cast %104 : vector<1x4x256xf32> to vector<4x256xf32>
    %cst_60 = arith.constant dense<0.000000e+00> : vector<4x256xf32>
    %106 = tpu.matmul %99, %78, %cst_60 {dimension_numbers = #tpu.dot_dimension_numbers<[1], [0], [0], [1], [0, 0, 1, 1], [], []>} : vector<4x64xf32>, vector<64x256xf32>, vector<4x256xf32> -> vector<4x256xf32>
    %107 = arith.addf %105, %106 : vector<4x256xf32>
    %108 = arith.negf %107 : vector<4x256xf32>
    %109 = math.exp %108 : vector<4x256xf32>
    %cst_61 = arith.constant 1.000000e+00 : f32
    %110 = vector.broadcast %cst_61 : f32 to vector<4x256xf32>
    %111 = arith.addf %110, %109 : vector<4x256xf32>
    %112 = arith.divf %110, %111 : vector<4x256xf32>
    %113 = math.tanh %107 : vector<4x256xf32>
    %114 = vector.extract_strided_slice %112 {offsets = [0, 0], sizes = [4, 64], strides = [1, 1]} : vector<4x256xf32> to vector<4x64xf32>
    %115 = vector.extract_strided_slice %112 {offsets = [0, 64], sizes = [4, 64], strides = [1, 1]} : vector<4x256xf32> to vector<4x64xf32>
    %116 = vector.extract_strided_slice %113 {offsets = [0, 128], sizes = [4, 64], strides = [1, 1]} : vector<4x256xf32> to vector<4x64xf32>
    %117 = vector.extract_strided_slice %112 {offsets = [0, 192], sizes = [4, 64], strides = [1, 1]} : vector<4x256xf32> to vector<4x64xf32>
    %118 = arith.mulf %115, %97 : vector<4x64xf32>
    %119 = arith.mulf %114, %116 : vector<4x64xf32>
    %120 = arith.addf %118, %119 : vector<4x64xf32>
    %121 = math.tanh %120 : vector<4x64xf32>
    %122 = arith.mulf %117, %121 : vector<4x64xf32>
    %123 = vector.extract_strided_slice %122 {offsets = [0, 0], sizes = [2, 32], strides = [1, 1]} : vector<4x64xf32> to vector<2x32xf32>
    %c2_62 = arith.constant 2 : index
    %c0_63 = arith.constant 0 : index
    %124 = vector.load %arg10[%c2_62, %c0_63] : memref<16x64xf32, #tpu.memory_space<vmem>>, vector<2x32xf32>
    tpu.vector_store %arg10[%c2_62, %c0_63], %123 {strides = array<i32>} : memref<16x64xf32, #tpu.memory_space<vmem>>, vector<2x32xf32>,
    %125 = vector.extract_strided_slice %122 {offsets = [2, 32], sizes = [2, 32], strides = [1, 1]} : vector<4x64xf32> to vector<2x32xf32>
    %c12 = arith.constant 12 : index
    %c32_64 = arith.constant 32 : index
    %126 = vector.load %arg10[%c12, %c32_64] : memref<16x64xf32, #tpu.memory_space<vmem>>, vector<2x32xf32>
    tpu.vector_store %arg10[%c12, %c32_64], %125 {strides = array<i32>} : memref<16x64xf32, #tpu.memory_space<vmem>>, vector<2x32xf32>,
    %c2_65 = arith.constant 2 : index
    %c0_66 = arith.constant 0 : index
    %c0_67 = arith.constant 0 : index
    %127 = vector.load %arg11[%c2_65, %c0_66, %c0_67] : memref<8x4x256xf32, #tpu.memory_space<vmem>>, vector<1x4x256xf32>
    %128 = vector.shape_cast %127 : vector<1x4x256xf32> to vector<4x256xf32>
    %cst_68 = arith.constant dense<0.000000e+00> : vector<4x256xf32>
    %129 = tpu.matmul %122, %78, %cst_68 {dimension_numbers = #tpu.dot_dimension_numbers<[1], [0], [0], [1], [0, 0, 1, 1], [], []>} : vector<4x64xf32>, vector<64x256xf32>, vector<4x256xf32> -> vector<4x256xf32>
    %130 = arith.addf %128, %129 : vector<4x256xf32>
    %131 = arith.negf %130 : vector<4x256xf32>
    %132 = math.exp %131 : vector<4x256xf32>
    %cst_69 = arith.constant 1.000000e+00 : f32
    %133 = vector.broadcast %cst_69 : f32 to vector<4x256xf32>
    %134 = arith.addf %133, %132 : vector<4x256xf32>
    %135 = arith.divf %133, %134 : vector<4x256xf32>
    %136 = math.tanh %130 : vector<4x256xf32>
    %137 = vector.extract_strided_slice %135 {offsets = [0, 0], sizes = [4, 64], strides = [1, 1]} : vector<4x256xf32> to vector<4x64xf32>
    %138 = vector.extract_strided_slice %135 {offsets = [0, 64], sizes = [4, 64], strides = [1, 1]} : vector<4x256xf32> to vector<4x64xf32>
    %139 = vector.extract_strided_slice %136 {offsets = [0, 128], sizes = [4, 64], strides = [1, 1]} : vector<4x256xf32> to vector<4x64xf32>
    %140 = vector.extract_strided_slice %135 {offsets = [0, 192], sizes = [4, 64], strides = [1, 1]} : vector<4x256xf32> to vector<4x64xf32>
    %141 = arith.mulf %138, %120 : vector<4x64xf32>
    %142 = arith.mulf %137, %139 : vector<4x64xf32>
    %143 = arith.addf %141, %142 : vector<4x64xf32>
    %144 = math.tanh %143 : vector<4x64xf32>
    %145 = arith.mulf %140, %144 : vector<4x64xf32>
    %146 = vector.extract_strided_slice %145 {offsets = [0, 0], sizes = [2, 32], strides = [1, 1]} : vector<4x64xf32> to vector<2x32xf32>
    %c4_70 = arith.constant 4 : index
    %c0_71 = arith.constant 0 : index
    %147 = vector.load %arg10[%c4_70, %c0_71] : memref<16x64xf32, #tpu.memory_space<vmem>>, vector<2x32xf32>
    tpu.vector_store %arg10[%c4_70, %c0_71], %146 {strides = array<i32>} : memref<16x64xf32, #tpu.memory_space<vmem>>, vector<2x32xf32>,
    %148 = vector.extract_strided_slice %145 {offsets = [2, 32], sizes = [2, 32], strides = [1, 1]} : vector<4x64xf32> to vector<2x32xf32>
    %c10 = arith.constant 10 : index
    %c32_72 = arith.constant 32 : index
    %149 = vector.load %arg10[%c10, %c32_72] : memref<16x64xf32, #tpu.memory_space<vmem>>, vector<2x32xf32>
    tpu.vector_store %arg10[%c10, %c32_72], %148 {strides = array<i32>} : memref<16x64xf32, #tpu.memory_space<vmem>>, vector<2x32xf32>,
    %c3_73 = arith.constant 3 : index
    %c0_74 = arith.constant 0 : index
    %c0_75 = arith.constant 0 : index
    %150 = vector.load %arg11[%c3_73, %c0_74, %c0_75] : memref<8x4x256xf32, #tpu.memory_space<vmem>>, vector<1x4x256xf32>
    %151 = vector.shape_cast %150 : vector<1x4x256xf32> to vector<4x256xf32>
    %cst_76 = arith.constant dense<0.000000e+00> : vector<4x256xf32>
    %152 = tpu.matmul %145, %78, %cst_76 {dimension_numbers = #tpu.dot_dimension_numbers<[1], [0], [0], [1], [0, 0, 1, 1], [], []>} : vector<4x64xf32>, vector<64x256xf32>, vector<4x256xf32> -> vector<4x256xf32>
    %153 = arith.addf %151, %152 : vector<4x256xf32>
    %154 = arith.negf %153 : vector<4x256xf32>
    %155 = math.exp %154 : vector<4x256xf32>
    %cst_77 = arith.constant 1.000000e+00 : f32
    %156 = vector.broadcast %cst_77 : f32 to vector<4x256xf32>
    %157 = arith.addf %156, %155 : vector<4x256xf32>
    %158 = arith.divf %156, %157 : vector<4x256xf32>
    %159 = math.tanh %153 : vector<4x256xf32>
    %160 = vector.extract_strided_slice %158 {offsets = [0, 0], sizes = [4, 64], strides = [1, 1]} : vector<4x256xf32> to vector<4x64xf32>
    %161 = vector.extract_strided_slice %158 {offsets = [0, 64], sizes = [4, 64], strides = [1, 1]} : vector<4x256xf32> to vector<4x64xf32>
    %162 = vector.extract_strided_slice %159 {offsets = [0, 128], sizes = [4, 64], strides = [1, 1]} : vector<4x256xf32> to vector<4x64xf32>
    %163 = vector.extract_strided_slice %158 {offsets = [0, 192], sizes = [4, 64], strides = [1, 1]} : vector<4x256xf32> to vector<4x64xf32>
    %164 = arith.mulf %161, %143 : vector<4x64xf32>
    %165 = arith.mulf %160, %162 : vector<4x64xf32>
    %166 = arith.addf %164, %165 : vector<4x64xf32>
    %167 = math.tanh %166 : vector<4x64xf32>
    %168 = arith.mulf %163, %167 : vector<4x64xf32>
    %169 = vector.extract_strided_slice %168 {offsets = [0, 0], sizes = [2, 32], strides = [1, 1]} : vector<4x64xf32> to vector<2x32xf32>
    %c6_78 = arith.constant 6 : index
    %c0_79 = arith.constant 0 : index
    %170 = vector.load %arg10[%c6_78, %c0_79] : memref<16x64xf32, #tpu.memory_space<vmem>>, vector<2x32xf32>
    tpu.vector_store %arg10[%c6_78, %c0_79], %169 {strides = array<i32>} : memref<16x64xf32, #tpu.memory_space<vmem>>, vector<2x32xf32>,
    %171 = vector.extract_strided_slice %168 {offsets = [2, 32], sizes = [2, 32], strides = [1, 1]} : vector<4x64xf32> to vector<2x32xf32>
    %c8 = arith.constant 8 : index
    %c32_80 = arith.constant 32 : index
    %172 = vector.load %arg10[%c8, %c32_80] : memref<16x64xf32, #tpu.memory_space<vmem>>, vector<2x32xf32>
    tpu.vector_store %arg10[%c8, %c32_80], %171 {strides = array<i32>} : memref<16x64xf32, #tpu.memory_space<vmem>>, vector<2x32xf32>,
    %c4_81 = arith.constant 4 : index
    %c0_82 = arith.constant 0 : index
    %c0_83 = arith.constant 0 : index
    %173 = vector.load %arg11[%c4_81, %c0_82, %c0_83] : memref<8x4x256xf32, #tpu.memory_space<vmem>>, vector<1x4x256xf32>
    %174 = vector.shape_cast %173 : vector<1x4x256xf32> to vector<4x256xf32>
    %cst_84 = arith.constant dense<0.000000e+00> : vector<4x256xf32>
    %175 = tpu.matmul %168, %78, %cst_84 {dimension_numbers = #tpu.dot_dimension_numbers<[1], [0], [0], [1], [0, 0, 1, 1], [], []>} : vector<4x64xf32>, vector<64x256xf32>, vector<4x256xf32> -> vector<4x256xf32>
    %176 = arith.addf %174, %175 : vector<4x256xf32>
    %177 = arith.negf %176 : vector<4x256xf32>
    %178 = math.exp %177 : vector<4x256xf32>
    %cst_85 = arith.constant 1.000000e+00 : f32
    %179 = vector.broadcast %cst_85 : f32 to vector<4x256xf32>
    %180 = arith.addf %179, %178 : vector<4x256xf32>
    %181 = arith.divf %179, %180 : vector<4x256xf32>
    %182 = math.tanh %176 : vector<4x256xf32>
    %183 = vector.extract_strided_slice %181 {offsets = [0, 0], sizes = [4, 64], strides = [1, 1]} : vector<4x256xf32> to vector<4x64xf32>
    %184 = vector.extract_strided_slice %181 {offsets = [0, 64], sizes = [4, 64], strides = [1, 1]} : vector<4x256xf32> to vector<4x64xf32>
    %185 = vector.extract_strided_slice %182 {offsets = [0, 128], sizes = [4, 64], strides = [1, 1]} : vector<4x256xf32> to vector<4x64xf32>
    %186 = vector.extract_strided_slice %181 {offsets = [0, 192], sizes = [4, 64], strides = [1, 1]} : vector<4x256xf32> to vector<4x64xf32>
    %187 = arith.mulf %184, %166 : vector<4x64xf32>
    %188 = arith.mulf %183, %185 : vector<4x64xf32>
    %189 = arith.addf %187, %188 : vector<4x64xf32>
    %190 = math.tanh %189 : vector<4x64xf32>
    %191 = arith.mulf %186, %190 : vector<4x64xf32>
    %192 = vector.extract_strided_slice %191 {offsets = [0, 0], sizes = [2, 32], strides = [1, 1]} : vector<4x64xf32> to vector<2x32xf32>
    %c8_86 = arith.constant 8 : index
    %c0_87 = arith.constant 0 : index
    %193 = vector.load %arg10[%c8_86, %c0_87] : memref<16x64xf32, #tpu.memory_space<vmem>>, vector<2x32xf32>
    tpu.vector_store %arg10[%c8_86, %c0_87], %192 {strides = array<i32>} : memref<16x64xf32, #tpu.memory_space<vmem>>, vector<2x32xf32>,
    %194 = vector.extract_strided_slice %191 {offsets = [2, 32], sizes = [2, 32], strides = [1, 1]} : vector<4x64xf32> to vector<2x32xf32>
    %c6_88 = arith.constant 6 : index
    %c32_89 = arith.constant 32 : index
    %195 = vector.load %arg10[%c6_88, %c32_89] : memref<16x64xf32, #tpu.memory_space<vmem>>, vector<2x32xf32>
    tpu.vector_store %arg10[%c6_88, %c32_89], %194 {strides = array<i32>} : memref<16x64xf32, #tpu.memory_space<vmem>>, vector<2x32xf32>,
    %c5_90 = arith.constant 5 : index
    %c0_91 = arith.constant 0 : index
    %c0_92 = arith.constant 0 : index
    %196 = vector.load %arg11[%c5_90, %c0_91, %c0_92] : memref<8x4x256xf32, #tpu.memory_space<vmem>>, vector<1x4x256xf32>
    %197 = vector.shape_cast %196 : vector<1x4x256xf32> to vector<4x256xf32>
    %cst_93 = arith.constant dense<0.000000e+00> : vector<4x256xf32>
    %198 = tpu.matmul %191, %78, %cst_93 {dimension_numbers = #tpu.dot_dimension_numbers<[1], [0], [0], [1], [0, 0, 1, 1], [], []>} : vector<4x64xf32>, vector<64x256xf32>, vector<4x256xf32> -> vector<4x256xf32>
    %199 = arith.addf %197, %198 : vector<4x256xf32>
    %200 = arith.negf %199 : vector<4x256xf32>
    %201 = math.exp %200 : vector<4x256xf32>
    %cst_94 = arith.constant 1.000000e+00 : f32
    %202 = vector.broadcast %cst_94 : f32 to vector<4x256xf32>
    %203 = arith.addf %202, %201 : vector<4x256xf32>
    %204 = arith.divf %202, %203 : vector<4x256xf32>
    %205 = math.tanh %199 : vector<4x256xf32>
    %206 = vector.extract_strided_slice %204 {offsets = [0, 0], sizes = [4, 64], strides = [1, 1]} : vector<4x256xf32> to vector<4x64xf32>
    %207 = vector.extract_strided_slice %204 {offsets = [0, 64], sizes = [4, 64], strides = [1, 1]} : vector<4x256xf32> to vector<4x64xf32>
    %208 = vector.extract_strided_slice %205 {offsets = [0, 128], sizes = [4, 64], strides = [1, 1]} : vector<4x256xf32> to vector<4x64xf32>
    %209 = vector.extract_strided_slice %204 {offsets = [0, 192], sizes = [4, 64], strides = [1, 1]} : vector<4x256xf32> to vector<4x64xf32>
    %210 = arith.mulf %207, %189 : vector<4x64xf32>
    %211 = arith.mulf %206, %208 : vector<4x64xf32>
    %212 = arith.addf %210, %211 : vector<4x64xf32>
    %213 = math.tanh %212 : vector<4x64xf32>
    %214 = arith.mulf %209, %213 : vector<4x64xf32>
    %215 = vector.extract_strided_slice %214 {offsets = [0, 0], sizes = [2, 32], strides = [1, 1]} : vector<4x64xf32> to vector<2x32xf32>
    %c10_95 = arith.constant 10 : index
    %c0_96 = arith.constant 0 : index
    %216 = vector.load %arg10[%c10_95, %c0_96] : memref<16x64xf32, #tpu.memory_space<vmem>>, vector<2x32xf32>
    tpu.vector_store %arg10[%c10_95, %c0_96], %215 {strides = array<i32>} : memref<16x64xf32, #tpu.memory_space<vmem>>, vector<2x32xf32>,
    %217 = vector.extract_strided_slice %214 {offsets = [2, 32], sizes = [2, 32], strides = [1, 1]} : vector<4x64xf32> to vector<2x32xf32>
    %c4_97 = arith.constant 4 : index
    %c32_98 = arith.constant 32 : index
    %218 = vector.load %arg10[%c4_97, %c32_98] : memref<16x64xf32, #tpu.memory_space<vmem>>, vector<2x32xf32>
    tpu.vector_store %arg10[%c4_97, %c32_98], %217 {strides = array<i32>} : memref<16x64xf32, #tpu.memory_space<vmem>>, vector<2x32xf32>,
    %c6_99 = arith.constant 6 : index
    %c0_100 = arith.constant 0 : index
    %c0_101 = arith.constant 0 : index
    %219 = vector.load %arg11[%c6_99, %c0_100, %c0_101] : memref<8x4x256xf32, #tpu.memory_space<vmem>>, vector<1x4x256xf32>
    %220 = vector.shape_cast %219 : vector<1x4x256xf32> to vector<4x256xf32>
    %cst_102 = arith.constant dense<0.000000e+00> : vector<4x256xf32>
    %221 = tpu.matmul %214, %78, %cst_102 {dimension_numbers = #tpu.dot_dimension_numbers<[1], [0], [0], [1], [0, 0, 1, 1], [], []>} : vector<4x64xf32>, vector<64x256xf32>, vector<4x256xf32> -> vector<4x256xf32>
    %222 = arith.addf %220, %221 : vector<4x256xf32>
    %223 = arith.negf %222 : vector<4x256xf32>
    %224 = math.exp %223 : vector<4x256xf32>
    %cst_103 = arith.constant 1.000000e+00 : f32
    %225 = vector.broadcast %cst_103 : f32 to vector<4x256xf32>
    %226 = arith.addf %225, %224 : vector<4x256xf32>
    %227 = arith.divf %225, %226 : vector<4x256xf32>
    %228 = math.tanh %222 : vector<4x256xf32>
    %229 = vector.extract_strided_slice %227 {offsets = [0, 0], sizes = [4, 64], strides = [1, 1]} : vector<4x256xf32> to vector<4x64xf32>
    %230 = vector.extract_strided_slice %227 {offsets = [0, 64], sizes = [4, 64], strides = [1, 1]} : vector<4x256xf32> to vector<4x64xf32>
    %231 = vector.extract_strided_slice %228 {offsets = [0, 128], sizes = [4, 64], strides = [1, 1]} : vector<4x256xf32> to vector<4x64xf32>
    %232 = vector.extract_strided_slice %227 {offsets = [0, 192], sizes = [4, 64], strides = [1, 1]} : vector<4x256xf32> to vector<4x64xf32>
    %233 = arith.mulf %230, %212 : vector<4x64xf32>
    %234 = arith.mulf %229, %231 : vector<4x64xf32>
    %235 = arith.addf %233, %234 : vector<4x64xf32>
    %236 = math.tanh %235 : vector<4x64xf32>
    %237 = arith.mulf %232, %236 : vector<4x64xf32>
    %238 = vector.extract_strided_slice %237 {offsets = [0, 0], sizes = [2, 32], strides = [1, 1]} : vector<4x64xf32> to vector<2x32xf32>
    %c12_104 = arith.constant 12 : index
    %c0_105 = arith.constant 0 : index
    %239 = vector.load %arg10[%c12_104, %c0_105] : memref<16x64xf32, #tpu.memory_space<vmem>>, vector<2x32xf32>
    tpu.vector_store %arg10[%c12_104, %c0_105], %238 {strides = array<i32>} : memref<16x64xf32, #tpu.memory_space<vmem>>, vector<2x32xf32>,
    %240 = vector.extract_strided_slice %237 {offsets = [2, 32], sizes = [2, 32], strides = [1, 1]} : vector<4x64xf32> to vector<2x32xf32>
    %c2_106 = arith.constant 2 : index
    %c32_107 = arith.constant 32 : index
    %241 = vector.load %arg10[%c2_106, %c32_107] : memref<16x64xf32, #tpu.memory_space<vmem>>, vector<2x32xf32>
    tpu.vector_store %arg10[%c2_106, %c32_107], %240 {strides = array<i32>} : memref<16x64xf32, #tpu.memory_space<vmem>>, vector<2x32xf32>,
    %c7_108 = arith.constant 7 : index
    %c0_109 = arith.constant 0 : index
    %c0_110 = arith.constant 0 : index
    %242 = vector.load %arg11[%c7_108, %c0_109, %c0_110] : memref<8x4x256xf32, #tpu.memory_space<vmem>>, vector<1x4x256xf32>
    %243 = vector.shape_cast %242 : vector<1x4x256xf32> to vector<4x256xf32>
    %cst_111 = arith.constant dense<0.000000e+00> : vector<4x256xf32>
    %244 = tpu.matmul %237, %78, %cst_111 {dimension_numbers = #tpu.dot_dimension_numbers<[1], [0], [0], [1], [0, 0, 1, 1], [], []>} : vector<4x64xf32>, vector<64x256xf32>, vector<4x256xf32> -> vector<4x256xf32>
    %245 = arith.addf %243, %244 : vector<4x256xf32>
    %246 = arith.negf %245 : vector<4x256xf32>
    %247 = math.exp %246 : vector<4x256xf32>
    %cst_112 = arith.constant 1.000000e+00 : f32
    %248 = vector.broadcast %cst_112 : f32 to vector<4x256xf32>
    %249 = arith.addf %248, %247 : vector<4x256xf32>
    %250 = arith.divf %248, %249 : vector<4x256xf32>
    %251 = math.tanh %245 : vector<4x256xf32>
    %252 = vector.extract_strided_slice %250 {offsets = [0, 0], sizes = [4, 64], strides = [1, 1]} : vector<4x256xf32> to vector<4x64xf32>
    %253 = vector.extract_strided_slice %250 {offsets = [0, 64], sizes = [4, 64], strides = [1, 1]} : vector<4x256xf32> to vector<4x64xf32>
    %254 = vector.extract_strided_slice %251 {offsets = [0, 128], sizes = [4, 64], strides = [1, 1]} : vector<4x256xf32> to vector<4x64xf32>
    %255 = vector.extract_strided_slice %250 {offsets = [0, 192], sizes = [4, 64], strides = [1, 1]} : vector<4x256xf32> to vector<4x64xf32>
    %256 = arith.mulf %253, %235 : vector<4x64xf32>
    %257 = arith.mulf %252, %254 : vector<4x64xf32>
    %258 = arith.addf %256, %257 : vector<4x64xf32>
    %259 = math.tanh %258 : vector<4x64xf32>
    %260 = arith.mulf %255, %259 : vector<4x64xf32>
    %261 = vector.extract_strided_slice %260 {offsets = [0, 0], sizes = [2, 32], strides = [1, 1]} : vector<4x64xf32> to vector<2x32xf32>
    %c14_113 = arith.constant 14 : index
    %c0_114 = arith.constant 0 : index
    %262 = vector.load %arg10[%c14_113, %c0_114] : memref<16x64xf32, #tpu.memory_space<vmem>>, vector<2x32xf32>
    tpu.vector_store %arg10[%c14_113, %c0_114], %261 {strides = array<i32>} : memref<16x64xf32, #tpu.memory_space<vmem>>, vector<2x32xf32>,
    %263 = vector.extract_strided_slice %260 {offsets = [2, 32], sizes = [2, 32], strides = [1, 1]} : vector<4x64xf32> to vector<2x32xf32>
    %c0_115 = arith.constant 0 : index
    %c32_116 = arith.constant 32 : index
    %264 = vector.load %arg10[%c0_115, %c32_116] : memref<16x64xf32, #tpu.memory_space<vmem>>, vector<2x32xf32>
    tpu.vector_store %arg10[%c0_115, %c32_116], %263 {strides = array<i32>} : memref<16x64xf32, #tpu.memory_space<vmem>>, vector<2x32xf32>,
    %c0_117 = arith.constant 0 : index
    %c0_118 = arith.constant 0 : index
    %265 = vector.load %arg10[%c0_117, %c0_118] : memref<16x64xf32, #tpu.memory_space<vmem>>, vector<16x64xf32>
    %c0_119 = arith.constant 0 : index
    %c0_120 = arith.constant 0 : index
    %266 = vector.load %arg4[%c0_119, %c0_120] : memref<64x512xf32, #tpu.memory_space<vmem>>, vector<64x512xf32>
    %cst_121 = arith.constant dense<0.000000e+00> : vector<16x512xf32>
    %267 = tpu.matmul %265, %266, %cst_121 {dimension_numbers = #tpu.dot_dimension_numbers<[1], [0], [0], [1], [0, 0, 1, 1], [], []>} : vector<16x64xf32>, vector<64x512xf32>, vector<16x512xf32> -> vector<16x512xf32>
    %c0_122 = arith.constant 0 : index
    %c0_123 = arith.constant 0 : index
    %268 = vector.load %arg6[%c0_122, %c0_123] : memref<1x512xf32, #tpu.memory_space<vmem>>, vector<1x512xf32>
    %269 = vector.broadcast %268 : vector<1x512xf32> to vector<16x512xf32>
    %270 = arith.addf %267, %269 : vector<16x512xf32>
    %271 = vector.extract_strided_slice %270 {offsets = [0, 0], sizes = [2, 512], strides = [1, 1]} : vector<16x512xf32> to vector<2x512xf32>
    %272 = vector.extract_strided_slice %271 {offsets = [0, 0], sizes = [2, 256], strides = [1, 1]} : vector<2x512xf32> to vector<2x256xf32>
    %c0_124 = arith.constant 0 : index
    %c0_125 = arith.constant 0 : index
    %c0_126 = arith.constant 0 : index
    %273 = vector.load %arg11[%c0_124, %c0_125, %c0_126] : memref<8x4x256xf32, #tpu.memory_space<vmem>>, vector<1x2x256xf32>
    %274 = vector.shape_cast %273 : vector<1x2x256xf32> to vector<2x256xf32>
    %275 = vector.shape_cast %272 : vector<2x256xf32> to vector<1x2x256xf32>
    tpu.vector_store %arg11[%c0_124, %c0_125, %c0_126], %275 {strides = array<i32>} : memref<8x4x256xf32, #tpu.memory_space<vmem>>, vector<1x2x256xf32>,
    %276 = vector.extract_strided_slice %271 {offsets = [0, 256], sizes = [2, 256], strides = [1, 1]} : vector<2x512xf32> to vector<2x256xf32>
    %c7_127 = arith.constant 7 : index
    %c2_128 = arith.constant 2 : index
    %c0_129 = arith.constant 0 : index
    %277 = vector.load %arg11[%c7_127, %c2_128, %c0_129] : memref<8x4x256xf32, #tpu.memory_space<vmem>>, vector<1x2x256xf32>
    %278 = vector.shape_cast %277 : vector<1x2x256xf32> to vector<2x256xf32>
    %279 = vector.shape_cast %276 : vector<2x256xf32> to vector<1x2x256xf32>
    tpu.vector_store %arg11[%c7_127, %c2_128, %c0_129], %279 {strides = array<i32>} : memref<8x4x256xf32, #tpu.memory_space<vmem>>, vector<1x2x256xf32>,
    %280 = vector.extract_strided_slice %270 {offsets = [2, 0], sizes = [2, 512], strides = [1, 1]} : vector<16x512xf32> to vector<2x512xf32>
    %281 = vector.extract_strided_slice %280 {offsets = [0, 0], sizes = [2, 256], strides = [1, 1]} : vector<2x512xf32> to vector<2x256xf32>
    %c1_130 = arith.constant 1 : index
    %c0_131 = arith.constant 0 : index
    %c0_132 = arith.constant 0 : index
    %282 = vector.load %arg11[%c1_130, %c0_131, %c0_132] : memref<8x4x256xf32, #tpu.memory_space<vmem>>, vector<1x2x256xf32>
    %283 = vector.shape_cast %282 : vector<1x2x256xf32> to vector<2x256xf32>
    %284 = vector.shape_cast %281 : vector<2x256xf32> to vector<1x2x256xf32>
    tpu.vector_store %arg11[%c1_130, %c0_131, %c0_132], %284 {strides = array<i32>} : memref<8x4x256xf32, #tpu.memory_space<vmem>>, vector<1x2x256xf32>,
    %285 = vector.extract_strided_slice %280 {offsets = [0, 256], sizes = [2, 256], strides = [1, 1]} : vector<2x512xf32> to vector<2x256xf32>
    %c6_133 = arith.constant 6 : index
    %c2_134 = arith.constant 2 : index
    %c0_135 = arith.constant 0 : index
    %286 = vector.load %arg11[%c6_133, %c2_134, %c0_135] : memref<8x4x256xf32, #tpu.memory_space<vmem>>, vector<1x2x256xf32>
    %287 = vector.shape_cast %286 : vector<1x2x256xf32> to vector<2x256xf32>
    %288 = vector.shape_cast %285 : vector<2x256xf32> to vector<1x2x256xf32>
    tpu.vector_store %arg11[%c6_133, %c2_134, %c0_135], %288 {strides = array<i32>} : memref<8x4x256xf32, #tpu.memory_space<vmem>>, vector<1x2x256xf32>,
    %289 = vector.extract_strided_slice %270 {offsets = [4, 0], sizes = [2, 512], strides = [1, 1]} : vector<16x512xf32> to vector<2x512xf32>
    %290 = vector.extract_strided_slice %289 {offsets = [0, 0], sizes = [2, 256], strides = [1, 1]} : vector<2x512xf32> to vector<2x256xf32>
    %c2_136 = arith.constant 2 : index
    %c0_137 = arith.constant 0 : index
    %c0_138 = arith.constant 0 : index
    %291 = vector.load %arg11[%c2_136, %c0_137, %c0_138] : memref<8x4x256xf32, #tpu.memory_space<vmem>>, vector<1x2x256xf32>
    %292 = vector.shape_cast %291 : vector<1x2x256xf32> to vector<2x256xf32>
    %293 = vector.shape_cast %290 : vector<2x256xf32> to vector<1x2x256xf32>
    tpu.vector_store %arg11[%c2_136, %c0_137, %c0_138], %293 {strides = array<i32>} : memref<8x4x256xf32, #tpu.memory_space<vmem>>, vector<1x2x256xf32>,
    %294 = vector.extract_strided_slice %289 {offsets = [0, 256], sizes = [2, 256], strides = [1, 1]} : vector<2x512xf32> to vector<2x256xf32>
    %c5_139 = arith.constant 5 : index
    %c2_140 = arith.constant 2 : index
    %c0_141 = arith.constant 0 : index
    %295 = vector.load %arg11[%c5_139, %c2_140, %c0_141] : memref<8x4x256xf32, #tpu.memory_space<vmem>>, vector<1x2x256xf32>
    %296 = vector.shape_cast %295 : vector<1x2x256xf32> to vector<2x256xf32>
    %297 = vector.shape_cast %294 : vector<2x256xf32> to vector<1x2x256xf32>
    tpu.vector_store %arg11[%c5_139, %c2_140, %c0_141], %297 {strides = array<i32>} : memref<8x4x256xf32, #tpu.memory_space<vmem>>, vector<1x2x256xf32>,
    %298 = vector.extract_strided_slice %270 {offsets = [6, 0], sizes = [2, 512], strides = [1, 1]} : vector<16x512xf32> to vector<2x512xf32>
    %299 = vector.extract_strided_slice %298 {offsets = [0, 0], sizes = [2, 256], strides = [1, 1]} : vector<2x512xf32> to vector<2x256xf32>
    %c3_142 = arith.constant 3 : index
    %c0_143 = arith.constant 0 : index
    %c0_144 = arith.constant 0 : index
    %300 = vector.load %arg11[%c3_142, %c0_143, %c0_144] : memref<8x4x256xf32, #tpu.memory_space<vmem>>, vector<1x2x256xf32>
    %301 = vector.shape_cast %300 : vector<1x2x256xf32> to vector<2x256xf32>
    %302 = vector.shape_cast %299 : vector<2x256xf32> to vector<1x2x256xf32>
    tpu.vector_store %arg11[%c3_142, %c0_143, %c0_144], %302 {strides = array<i32>} : memref<8x4x256xf32, #tpu.memory_space<vmem>>, vector<1x2x256xf32>,
    %303 = vector.extract_strided_slice %298 {offsets = [0, 256], sizes = [2, 256], strides = [1, 1]} : vector<2x512xf32> to vector<2x256xf32>
    %c4_145 = arith.constant 4 : index
    %c2_146 = arith.constant 2 : index
    %c0_147 = arith.constant 0 : index
    %304 = vector.load %arg11[%c4_145, %c2_146, %c0_147] : memref<8x4x256xf32, #tpu.memory_space<vmem>>, vector<1x2x256xf32>
    %305 = vector.shape_cast %304 : vector<1x2x256xf32> to vector<2x256xf32>
    %306 = vector.shape_cast %303 : vector<2x256xf32> to vector<1x2x256xf32>
    tpu.vector_store %arg11[%c4_145, %c2_146, %c0_147], %306 {strides = array<i32>} : memref<8x4x256xf32, #tpu.memory_space<vmem>>, vector<1x2x256xf32>,
    %307 = vector.extract_strided_slice %270 {offsets = [8, 0], sizes = [2, 512], strides = [1, 1]} : vector<16x512xf32> to vector<2x512xf32>
    %308 = vector.extract_strided_slice %307 {offsets = [0, 0], sizes = [2, 256], strides = [1, 1]} : vector<2x512xf32> to vector<2x256xf32>
    %c4_148 = arith.constant 4 : index
    %c0_149 = arith.constant 0 : index
    %c0_150 = arith.constant 0 : index
    %309 = vector.load %arg11[%c4_148, %c0_149, %c0_150] : memref<8x4x256xf32, #tpu.memory_space<vmem>>, vector<1x2x256xf32>
    %310 = vector.shape_cast %309 : vector<1x2x256xf32> to vector<2x256xf32>
    %311 = vector.shape_cast %308 : vector<2x256xf32> to vector<1x2x256xf32>
    tpu.vector_store %arg11[%c4_148, %c0_149, %c0_150], %311 {strides = array<i32>} : memref<8x4x256xf32, #tpu.memory_space<vmem>>, vector<1x2x256xf32>,
    %312 = vector.extract_strided_slice %307 {offsets = [0, 256], sizes = [2, 256], strides = [1, 1]} : vector<2x512xf32> to vector<2x256xf32>
    %c3_151 = arith.constant 3 : index
    %c2_152 = arith.constant 2 : index
    %c0_153 = arith.constant 0 : index
    %313 = vector.load %arg11[%c3_151, %c2_152, %c0_153] : memref<8x4x256xf32, #tpu.memory_space<vmem>>, vector<1x2x256xf32>
    %314 = vector.shape_cast %313 : vector<1x2x256xf32> to vector<2x256xf32>
    %315 = vector.shape_cast %312 : vector<2x256xf32> to vector<1x2x256xf32>
    tpu.vector_store %arg11[%c3_151, %c2_152, %c0_153], %315 {strides = array<i32>} : memref<8x4x256xf32, #tpu.memory_space<vmem>>, vector<1x2x256xf32>,
    %316 = vector.extract_strided_slice %270 {offsets = [10, 0], sizes = [2, 512], strides = [1, 1]} : vector<16x512xf32> to vector<2x512xf32>
    %317 = vector.extract_strided_slice %316 {offsets = [0, 0], sizes = [2, 256], strides = [1, 1]} : vector<2x512xf32> to vector<2x256xf32>
    %c5_154 = arith.constant 5 : index
    %c0_155 = arith.constant 0 : index
    %c0_156 = arith.constant 0 : index
    %318 = vector.load %arg11[%c5_154, %c0_155, %c0_156] : memref<8x4x256xf32, #tpu.memory_space<vmem>>, vector<1x2x256xf32>
    %319 = vector.shape_cast %318 : vector<1x2x256xf32> to vector<2x256xf32>
    %320 = vector.shape_cast %317 : vector<2x256xf32> to vector<1x2x256xf32>
    tpu.vector_store %arg11[%c5_154, %c0_155, %c0_156], %320 {strides = array<i32>} : memref<8x4x256xf32, #tpu.memory_space<vmem>>, vector<1x2x256xf32>,
    %321 = vector.extract_strided_slice %316 {offsets = [0, 256], sizes = [2, 256], strides = [1, 1]} : vector<2x512xf32> to vector<2x256xf32>
    %c2_157 = arith.constant 2 : index
    %c2_158 = arith.constant 2 : index
    %c0_159 = arith.constant 0 : index
    %322 = vector.load %arg11[%c2_157, %c2_158, %c0_159] : memref<8x4x256xf32, #tpu.memory_space<vmem>>, vector<1x2x256xf32>
    %323 = vector.shape_cast %322 : vector<1x2x256xf32> to vector<2x256xf32>
    %324 = vector.shape_cast %321 : vector<2x256xf32> to vector<1x2x256xf32>
    tpu.vector_store %arg11[%c2_157, %c2_158, %c0_159], %324 {strides = array<i32>} : memref<8x4x256xf32, #tpu.memory_space<vmem>>, vector<1x2x256xf32>,
    %325 = vector.extract_strided_slice %270 {offsets = [12, 0], sizes = [2, 512], strides = [1, 1]} : vector<16x512xf32> to vector<2x512xf32>
    %326 = vector.extract_strided_slice %325 {offsets = [0, 0], sizes = [2, 256], strides = [1, 1]} : vector<2x512xf32> to vector<2x256xf32>
    %c6_160 = arith.constant 6 : index
    %c0_161 = arith.constant 0 : index
    %c0_162 = arith.constant 0 : index
    %327 = vector.load %arg11[%c6_160, %c0_161, %c0_162] : memref<8x4x256xf32, #tpu.memory_space<vmem>>, vector<1x2x256xf32>
    %328 = vector.shape_cast %327 : vector<1x2x256xf32> to vector<2x256xf32>
    %329 = vector.shape_cast %326 : vector<2x256xf32> to vector<1x2x256xf32>
    tpu.vector_store %arg11[%c6_160, %c0_161, %c0_162], %329 {strides = array<i32>} : memref<8x4x256xf32, #tpu.memory_space<vmem>>, vector<1x2x256xf32>,
    %330 = vector.extract_strided_slice %325 {offsets = [0, 256], sizes = [2, 256], strides = [1, 1]} : vector<2x512xf32> to vector<2x256xf32>
    %c1_163 = arith.constant 1 : index
    %c2_164 = arith.constant 2 : index
    %c0_165 = arith.constant 0 : index
    %331 = vector.load %arg11[%c1_163, %c2_164, %c0_165] : memref<8x4x256xf32, #tpu.memory_space<vmem>>, vector<1x2x256xf32>
    %332 = vector.shape_cast %331 : vector<1x2x256xf32> to vector<2x256xf32>
    %333 = vector.shape_cast %330 : vector<2x256xf32> to vector<1x2x256xf32>
    tpu.vector_store %arg11[%c1_163, %c2_164, %c0_165], %333 {strides = array<i32>} : memref<8x4x256xf32, #tpu.memory_space<vmem>>, vector<1x2x256xf32>,
    %334 = vector.extract_strided_slice %270 {offsets = [14, 0], sizes = [2, 512], strides = [1, 1]} : vector<16x512xf32> to vector<2x512xf32>
    %335 = vector.extract_strided_slice %334 {offsets = [0, 0], sizes = [2, 256], strides = [1, 1]} : vector<2x512xf32> to vector<2x256xf32>
    %c7_166 = arith.constant 7 : index
    %c0_167 = arith.constant 0 : index
    %c0_168 = arith.constant 0 : index
    %336 = vector.load %arg11[%c7_166, %c0_167, %c0_168] : memref<8x4x256xf32, #tpu.memory_space<vmem>>, vector<1x2x256xf32>
    %337 = vector.shape_cast %336 : vector<1x2x256xf32> to vector<2x256xf32>
    %338 = vector.shape_cast %335 : vector<2x256xf32> to vector<1x2x256xf32>
    tpu.vector_store %arg11[%c7_166, %c0_167, %c0_168], %338 {strides = array<i32>} : memref<8x4x256xf32, #tpu.memory_space<vmem>>, vector<1x2x256xf32>,
    %339 = vector.extract_strided_slice %334 {offsets = [0, 256], sizes = [2, 256], strides = [1, 1]} : vector<2x512xf32> to vector<2x256xf32>
    %c0_169 = arith.constant 0 : index
    %c2_170 = arith.constant 2 : index
    %c0_171 = arith.constant 0 : index
    %340 = vector.load %arg11[%c0_169, %c2_170, %c0_171] : memref<8x4x256xf32, #tpu.memory_space<vmem>>, vector<1x2x256xf32>
    %341 = vector.shape_cast %340 : vector<1x2x256xf32> to vector<2x256xf32>
    %342 = vector.shape_cast %339 : vector<2x256xf32> to vector<1x2x256xf32>
    tpu.vector_store %arg11[%c0_169, %c2_170, %c0_171], %342 {strides = array<i32>} : memref<8x4x256xf32, #tpu.memory_space<vmem>>, vector<1x2x256xf32>,
    %c0_172 = arith.constant 0 : index
    %c0_173 = arith.constant 0 : index
    %343 = vector.load %arg5[%c0_172, %c0_173] : memref<64x256xf32, #tpu.memory_space<vmem>>, vector<64x256xf32>
    %cst_174 = arith.constant 0.000000e+00 : f32
    %344 = vector.broadcast %cst_174 : f32 to vector<4x64xf32>
    %cst_175 = arith.constant 0.000000e+00 : f32
    %345 = vector.broadcast %cst_175 : f32 to vector<4x64xf32>
    %c0_176 = arith.constant 0 : index
    %c0_177 = arith.constant 0 : index
    %c0_178 = arith.constant 0 : index
    %346 = vector.load %arg11[%c0_176, %c0_177, %c0_178] : memref<8x4x256xf32, #tpu.memory_space<vmem>>, vector<1x4x256xf32>
    %347 = vector.shape_cast %346 : vector<1x4x256xf32> to vector<4x256xf32>
    %cst_179 = arith.constant dense<0.000000e+00> : vector<4x256xf32>
    %348 = tpu.matmul %344, %343, %cst_179 {dimension_numbers = #tpu.dot_dimension_numbers<[1], [0], [0], [1], [0, 0, 1, 1], [], []>} : vector<4x64xf32>, vector<64x256xf32>, vector<4x256xf32> -> vector<4x256xf32>
    %349 = arith.addf %347, %348 : vector<4x256xf32>
    %350 = arith.negf %349 : vector<4x256xf32>
    %351 = math.exp %350 : vector<4x256xf32>
    %cst_180 = arith.constant 1.000000e+00 : f32
    %352 = vector.broadcast %cst_180 : f32 to vector<4x256xf32>
    %353 = arith.addf %352, %351 : vector<4x256xf32>
    %354 = arith.divf %352, %353 : vector<4x256xf32>
    %355 = math.tanh %349 : vector<4x256xf32>
    %356 = vector.extract_strided_slice %354 {offsets = [0, 0], sizes = [4, 64], strides = [1, 1]} : vector<4x256xf32> to vector<4x64xf32>
    %357 = vector.extract_strided_slice %354 {offsets = [0, 64], sizes = [4, 64], strides = [1, 1]} : vector<4x256xf32> to vector<4x64xf32>
    %358 = vector.extract_strided_slice %355 {offsets = [0, 128], sizes = [4, 64], strides = [1, 1]} : vector<4x256xf32> to vector<4x64xf32>
    %359 = vector.extract_strided_slice %354 {offsets = [0, 192], sizes = [4, 64], strides = [1, 1]} : vector<4x256xf32> to vector<4x64xf32>
    %360 = arith.mulf %357, %345 : vector<4x64xf32>
    %361 = arith.mulf %356, %358 : vector<4x64xf32>
    %362 = arith.addf %360, %361 : vector<4x64xf32>
    %363 = math.tanh %362 : vector<4x64xf32>
    %364 = arith.mulf %359, %363 : vector<4x64xf32>
    %365 = vector.extract_strided_slice %364 {offsets = [2, 0], sizes = [2, 64], strides = [1, 1]} : vector<4x64xf32> to vector<2x64xf32>
    %c1_181 = arith.constant 1 : index
    %c0_182 = arith.constant 0 : index
    %c0_183 = arith.constant 0 : index
    %366 = vector.load %arg11[%c1_181, %c0_182, %c0_183] : memref<8x4x256xf32, #tpu.memory_space<vmem>>, vector<1x4x256xf32>
    %367 = vector.shape_cast %366 : vector<1x4x256xf32> to vector<4x256xf32>
    %cst_184 = arith.constant dense<0.000000e+00> : vector<4x256xf32>
    %368 = tpu.matmul %364, %343, %cst_184 {dimension_numbers = #tpu.dot_dimension_numbers<[1], [0], [0], [1], [0, 0, 1, 1], [], []>} : vector<4x64xf32>, vector<64x256xf32>, vector<4x256xf32> -> vector<4x256xf32>
    %369 = arith.addf %367, %368 : vector<4x256xf32>
    %370 = arith.negf %369 : vector<4x256xf32>
    %371 = math.exp %370 : vector<4x256xf32>
    %cst_185 = arith.constant 1.000000e+00 : f32
    %372 = vector.broadcast %cst_185 : f32 to vector<4x256xf32>
    %373 = arith.addf %372, %371 : vector<4x256xf32>
    %374 = arith.divf %372, %373 : vector<4x256xf32>
    %375 = math.tanh %369 : vector<4x256xf32>
    %376 = vector.extract_strided_slice %374 {offsets = [0, 0], sizes = [4, 64], strides = [1, 1]} : vector<4x256xf32> to vector<4x64xf32>
    %377 = vector.extract_strided_slice %374 {offsets = [0, 64], sizes = [4, 64], strides = [1, 1]} : vector<4x256xf32> to vector<4x64xf32>
    %378 = vector.extract_strided_slice %375 {offsets = [0, 128], sizes = [4, 64], strides = [1, 1]} : vector<4x256xf32> to vector<4x64xf32>
    %379 = vector.extract_strided_slice %374 {offsets = [0, 192], sizes = [4, 64], strides = [1, 1]} : vector<4x256xf32> to vector<4x64xf32>
    %380 = arith.mulf %377, %362 : vector<4x64xf32>
    %381 = arith.mulf %376, %378 : vector<4x64xf32>
    %382 = arith.addf %380, %381 : vector<4x64xf32>
    %383 = math.tanh %382 : vector<4x64xf32>
    %384 = arith.mulf %379, %383 : vector<4x64xf32>
    %c2_186 = arith.constant 2 : index
    %c0_187 = arith.constant 0 : index
    %c0_188 = arith.constant 0 : index
    %385 = vector.load %arg11[%c2_186, %c0_187, %c0_188] : memref<8x4x256xf32, #tpu.memory_space<vmem>>, vector<1x4x256xf32>
    %386 = vector.shape_cast %385 : vector<1x4x256xf32> to vector<4x256xf32>
    %cst_189 = arith.constant dense<0.000000e+00> : vector<4x256xf32>
    %387 = tpu.matmul %384, %343, %cst_189 {dimension_numbers = #tpu.dot_dimension_numbers<[1], [0], [0], [1], [0, 0, 1, 1], [], []>} : vector<4x64xf32>, vector<64x256xf32>, vector<4x256xf32> -> vector<4x256xf32>
    %388 = arith.addf %386, %387 : vector<4x256xf32>
    %389 = arith.negf %388 : vector<4x256xf32>
    %390 = math.exp %389 : vector<4x256xf32>
    %cst_190 = arith.constant 1.000000e+00 : f32
    %391 = vector.broadcast %cst_190 : f32 to vector<4x256xf32>
    %392 = arith.addf %391, %390 : vector<4x256xf32>
    %393 = arith.divf %391, %392 : vector<4x256xf32>
    %394 = math.tanh %388 : vector<4x256xf32>
    %395 = vector.extract_strided_slice %393 {offsets = [0, 0], sizes = [4, 64], strides = [1, 1]} : vector<4x256xf32> to vector<4x64xf32>
    %396 = vector.extract_strided_slice %393 {offsets = [0, 64], sizes = [4, 64], strides = [1, 1]} : vector<4x256xf32> to vector<4x64xf32>
    %397 = vector.extract_strided_slice %394 {offsets = [0, 128], sizes = [4, 64], strides = [1, 1]} : vector<4x256xf32> to vector<4x64xf32>
    %398 = vector.extract_strided_slice %393 {offsets = [0, 192], sizes = [4, 64], strides = [1, 1]} : vector<4x256xf32> to vector<4x64xf32>
    %399 = arith.mulf %396, %382 : vector<4x64xf32>
    %400 = arith.mulf %395, %397 : vector<4x64xf32>
    %401 = arith.addf %399, %400 : vector<4x64xf32>
    %402 = math.tanh %401 : vector<4x64xf32>
    %403 = arith.mulf %398, %402 : vector<4x64xf32>
    %c3_191 = arith.constant 3 : index
    %c0_192 = arith.constant 0 : index
    %c0_193 = arith.constant 0 : index
    %404 = vector.load %arg11[%c3_191, %c0_192, %c0_193] : memref<8x4x256xf32, #tpu.memory_space<vmem>>, vector<1x4x256xf32>
    %405 = vector.shape_cast %404 : vector<1x4x256xf32> to vector<4x256xf32>
    %cst_194 = arith.constant dense<0.000000e+00> : vector<4x256xf32>
    %406 = tpu.matmul %403, %343, %cst_194 {dimension_numbers = #tpu.dot_dimension_numbers<[1], [0], [0], [1], [0, 0, 1, 1], [], []>} : vector<4x64xf32>, vector<64x256xf32>, vector<4x256xf32> -> vector<4x256xf32>
    %407 = arith.addf %405, %406 : vector<4x256xf32>
    %408 = arith.negf %407 : vector<4x256xf32>
    %409 = math.exp %408 : vector<4x256xf32>
    %cst_195 = arith.constant 1.000000e+00 : f32
    %410 = vector.broadcast %cst_195 : f32 to vector<4x256xf32>
    %411 = arith.addf %410, %409 : vector<4x256xf32>
    %412 = arith.divf %410, %411 : vector<4x256xf32>
    %413 = math.tanh %407 : vector<4x256xf32>
    %414 = vector.extract_strided_slice %412 {offsets = [0, 0], sizes = [4, 64], strides = [1, 1]} : vector<4x256xf32> to vector<4x64xf32>
    %415 = vector.extract_strided_slice %412 {offsets = [0, 64], sizes = [4, 64], strides = [1, 1]} : vector<4x256xf32> to vector<4x64xf32>
    %416 = vector.extract_strided_slice %413 {offsets = [0, 128], sizes = [4, 64], strides = [1, 1]} : vector<4x256xf32> to vector<4x64xf32>
    %417 = vector.extract_strided_slice %412 {offsets = [0, 192], sizes = [4, 64], strides = [1, 1]} : vector<4x256xf32> to vector<4x64xf32>
    %418 = arith.mulf %415, %401 : vector<4x64xf32>
    %419 = arith.mulf %414, %416 : vector<4x64xf32>
    %420 = arith.addf %418, %419 : vector<4x64xf32>
    %421 = math.tanh %420 : vector<4x64xf32>
    %422 = arith.mulf %417, %421 : vector<4x64xf32>
    %c4_196 = arith.constant 4 : index
    %c0_197 = arith.constant 0 : index
    %c0_198 = arith.constant 0 : index
    %423 = vector.load %arg11[%c4_196, %c0_197, %c0_198] : memref<8x4x256xf32, #tpu.memory_space<vmem>>, vector<1x4x256xf32>
    %424 = vector.shape_cast %423 : vector<1x4x256xf32> to vector<4x256xf32>
    %cst_199 = arith.constant dense<0.000000e+00> : vector<4x256xf32>
    %425 = tpu.matmul %422, %343, %cst_199 {dimension_numbers = #tpu.dot_dimension_numbers<[1], [0], [0], [1], [0, 0, 1, 1], [], []>} : vector<4x64xf32>, vector<64x256xf32>, vector<4x256xf32> -> vector<4x256xf32>
    %426 = arith.addf %424, %425 : vector<4x256xf32>
    %427 = arith.negf %426 : vector<4x256xf32>
    %428 = math.exp %427 : vector<4x256xf32>
    %cst_200 = arith.constant 1.000000e+00 : f32
    %429 = vector.broadcast %cst_200 : f32 to vector<4x256xf32>
    %430 = arith.addf %429, %428 : vector<4x256xf32>
    %431 = arith.divf %429, %430 : vector<4x256xf32>
    %432 = math.tanh %426 : vector<4x256xf32>
    %433 = vector.extract_strided_slice %431 {offsets = [0, 0], sizes = [4, 64], strides = [1, 1]} : vector<4x256xf32> to vector<4x64xf32>
    %434 = vector.extract_strided_slice %431 {offsets = [0, 64], sizes = [4, 64], strides = [1, 1]} : vector<4x256xf32> to vector<4x64xf32>
    %435 = vector.extract_strided_slice %432 {offsets = [0, 128], sizes = [4, 64], strides = [1, 1]} : vector<4x256xf32> to vector<4x64xf32>
    %436 = vector.extract_strided_slice %431 {offsets = [0, 192], sizes = [4, 64], strides = [1, 1]} : vector<4x256xf32> to vector<4x64xf32>
    %437 = arith.mulf %434, %420 : vector<4x64xf32>
    %438 = arith.mulf %433, %435 : vector<4x64xf32>
    %439 = arith.addf %437, %438 : vector<4x64xf32>
    %440 = math.tanh %439 : vector<4x64xf32>
    %441 = arith.mulf %436, %440 : vector<4x64xf32>
    %c5_201 = arith.constant 5 : index
    %c0_202 = arith.constant 0 : index
    %c0_203 = arith.constant 0 : index
    %442 = vector.load %arg11[%c5_201, %c0_202, %c0_203] : memref<8x4x256xf32, #tpu.memory_space<vmem>>, vector<1x4x256xf32>
    %443 = vector.shape_cast %442 : vector<1x4x256xf32> to vector<4x256xf32>
    %cst_204 = arith.constant dense<0.000000e+00> : vector<4x256xf32>
    %444 = tpu.matmul %441, %343, %cst_204 {dimension_numbers = #tpu.dot_dimension_numbers<[1], [0], [0], [1], [0, 0, 1, 1], [], []>} : vector<4x64xf32>, vector<64x256xf32>, vector<4x256xf32> -> vector<4x256xf32>
    %445 = arith.addf %443, %444 : vector<4x256xf32>
    %446 = arith.negf %445 : vector<4x256xf32>
    %447 = math.exp %446 : vector<4x256xf32>
    %cst_205 = arith.constant 1.000000e+00 : f32
    %448 = vector.broadcast %cst_205 : f32 to vector<4x256xf32>
    %449 = arith.addf %448, %447 : vector<4x256xf32>
    %450 = arith.divf %448, %449 : vector<4x256xf32>
    %451 = math.tanh %445 : vector<4x256xf32>
    %452 = vector.extract_strided_slice %450 {offsets = [0, 0], sizes = [4, 64], strides = [1, 1]} : vector<4x256xf32> to vector<4x64xf32>
    %453 = vector.extract_strided_slice %450 {offsets = [0, 64], sizes = [4, 64], strides = [1, 1]} : vector<4x256xf32> to vector<4x64xf32>
    %454 = vector.extract_strided_slice %451 {offsets = [0, 128], sizes = [4, 64], strides = [1, 1]} : vector<4x256xf32> to vector<4x64xf32>
    %455 = vector.extract_strided_slice %450 {offsets = [0, 192], sizes = [4, 64], strides = [1, 1]} : vector<4x256xf32> to vector<4x64xf32>
    %456 = arith.mulf %453, %439 : vector<4x64xf32>
    %457 = arith.mulf %452, %454 : vector<4x64xf32>
    %458 = arith.addf %456, %457 : vector<4x64xf32>
    %459 = math.tanh %458 : vector<4x64xf32>
    %460 = arith.mulf %455, %459 : vector<4x64xf32>
    %c6_206 = arith.constant 6 : index
    %c0_207 = arith.constant 0 : index
    %c0_208 = arith.constant 0 : index
    %461 = vector.load %arg11[%c6_206, %c0_207, %c0_208] : memref<8x4x256xf32, #tpu.memory_space<vmem>>, vector<1x4x256xf32>
    %462 = vector.shape_cast %461 : vector<1x4x256xf32> to vector<4x256xf32>
    %cst_209 = arith.constant dense<0.000000e+00> : vector<4x256xf32>
    %463 = tpu.matmul %460, %343, %cst_209 {dimension_numbers = #tpu.dot_dimension_numbers<[1], [0], [0], [1], [0, 0, 1, 1], [], []>} : vector<4x64xf32>, vector<64x256xf32>, vector<4x256xf32> -> vector<4x256xf32>
    %464 = arith.addf %462, %463 : vector<4x256xf32>
    %465 = arith.negf %464 : vector<4x256xf32>
    %466 = math.exp %465 : vector<4x256xf32>
    %cst_210 = arith.constant 1.000000e+00 : f32
    %467 = vector.broadcast %cst_210 : f32 to vector<4x256xf32>
    %468 = arith.addf %467, %466 : vector<4x256xf32>
    %469 = arith.divf %467, %468 : vector<4x256xf32>
    %470 = math.tanh %464 : vector<4x256xf32>
    %471 = vector.extract_strided_slice %469 {offsets = [0, 0], sizes = [4, 64], strides = [1, 1]} : vector<4x256xf32> to vector<4x64xf32>
    %472 = vector.extract_strided_slice %469 {offsets = [0, 64], sizes = [4, 64], strides = [1, 1]} : vector<4x256xf32> to vector<4x64xf32>
    %473 = vector.extract_strided_slice %470 {offsets = [0, 128], sizes = [4, 64], strides = [1, 1]} : vector<4x256xf32> to vector<4x64xf32>
    %474 = vector.extract_strided_slice %469 {offsets = [0, 192], sizes = [4, 64], strides = [1, 1]} : vector<4x256xf32> to vector<4x64xf32>
    %475 = arith.mulf %472, %458 : vector<4x64xf32>
    %476 = arith.mulf %471, %473 : vector<4x64xf32>
    %477 = arith.addf %475, %476 : vector<4x64xf32>
    %478 = math.tanh %477 : vector<4x64xf32>
    %479 = arith.mulf %474, %478 : vector<4x64xf32>
    %c7_211 = arith.constant 7 : index
    %c0_212 = arith.constant 0 : index
    %c0_213 = arith.constant 0 : index
    %480 = vector.load %arg11[%c7_211, %c0_212, %c0_213] : memref<8x4x256xf32, #tpu.memory_space<vmem>>, vector<1x4x256xf32>
    %481 = vector.shape_cast %480 : vector<1x4x256xf32> to vector<4x256xf32>
    %cst_214 = arith.constant dense<0.000000e+00> : vector<4x256xf32>
    %482 = tpu.matmul %479, %343, %cst_214 {dimension_numbers = #tpu.dot_dimension_numbers<[1], [0], [0], [1], [0, 0, 1, 1], [], []>} : vector<4x64xf32>, vector<64x256xf32>, vector<4x256xf32> -> vector<4x256xf32>
    %483 = arith.addf %481, %482 : vector<4x256xf32>
    %484 = arith.negf %483 : vector<4x256xf32>
    %485 = math.exp %484 : vector<4x256xf32>
    %cst_215 = arith.constant 1.000000e+00 : f32
    %486 = vector.broadcast %cst_215 : f32 to vector<4x256xf32>
    %487 = arith.addf %486, %485 : vector<4x256xf32>
    %488 = arith.divf %486, %487 : vector<4x256xf32>
    %489 = math.tanh %483 : vector<4x256xf32>
    %490 = vector.extract_strided_slice %488 {offsets = [0, 0], sizes = [4, 64], strides = [1, 1]} : vector<4x256xf32> to vector<4x64xf32>
    %491 = vector.extract_strided_slice %488 {offsets = [0, 64], sizes = [4, 64], strides = [1, 1]} : vector<4x256xf32> to vector<4x64xf32>
    %492 = vector.extract_strided_slice %489 {offsets = [0, 128], sizes = [4, 64], strides = [1, 1]} : vector<4x256xf32> to vector<4x64xf32>
    %493 = vector.extract_strided_slice %488 {offsets = [0, 192], sizes = [4, 64], strides = [1, 1]} : vector<4x256xf32> to vector<4x64xf32>
    %494 = arith.mulf %491, %477 : vector<4x64xf32>
    %495 = arith.mulf %490, %492 : vector<4x64xf32>
    %496 = arith.addf %494, %495 : vector<4x64xf32>
    %497 = math.tanh %496 : vector<4x64xf32>
    %498 = arith.mulf %493, %497 : vector<4x64xf32>
    %499 = vector.extract_strided_slice %498 {offsets = [0, 0], sizes = [2, 64], strides = [1, 1]} : vector<4x64xf32> to vector<2x64xf32>
    %500 = arith.addf %499, %365 : vector<2x64xf32>
    %c0_216 = arith.constant 0 : index
    %c0_217 = arith.constant 0 : index
    %501 = vector.load %arg7[%c0_216, %c0_217] : memref<1x64xf32, #tpu.memory_space<vmem>>, vector<1x64xf32>
    %502 = vector.broadcast %501 : vector<1x64xf32> to vector<2x64xf32>
    %503 = arith.mulf %500, %502 : vector<2x64xf32>
    %cst_218 = arith.constant dense<0.000000e+00> : vector<2xf32>
    %504 = vector.multi_reduction <add>, %503, %cst_218 [1] : vector<2x64xf32> to vector<2xf32>
    %505 = vector.shape_cast %504 : vector<2xf32> to vector<2x1xf32>
    %c0_219 = arith.constant 0 : index
    %c0_220 = arith.constant 0 : index
    %506 = vector.load %arg8[%c0_219, %c0_220] : memref<1x1xf32, #tpu.memory_space<vmem>>, vector<1x1xf32>
    %507 = vector.broadcast %506 : vector<1x1xf32> to vector<2x1xf32>
    %508 = arith.addf %505, %507 : vector<2x1xf32>
    %c0_221 = arith.constant 0 : index
    %c0_222 = arith.constant 0 : index
    %509 = vector.load %arg9[%c0_221, %c0_222] : memref<2x1xf32, #tpu.memory_space<vmem>>, vector<2x1xf32>
    tpu.vector_store %arg9[%c0_221, %c0_222], %508 {strides = array<i32>} : memref<2x1xf32, #tpu.memory_space<vmem>>, vector<2x1xf32>,
    return
  }
}

</mosaic_0001>

<bundles_post_ra>
// kernel: tpu_custom_call.1
= control target key start
LH: loop header
LB: loop body
LE: loop exit
PB: predicated region body
PF: predicated region fallthrough
CT: control target
= control target key end

     0   :  { %s3400_s0 = inlined_call_operand.vmem [shape: f32[16,4], index: 0, kind: input, shape index: {}]   ;;  %s3401_s1 = inlined_call_operand.vmem [shape: f32[4,512], index: 1, kind: input, shape index: {}]   ;;  %s3402_s2 = inlined_call_operand.hbm [shape: f32[64,256], index: 2, kind: input, shape index: {}]   ;;  %s3403_s3 = inlined_call_operand.vmem [shape: f32[1,512], index: 3, kind: input, shape index: {}]   ;;  %s3404_s4 = inlined_call_operand.hbm [shape: f32[64,512], index: 4, kind: input, shape index: {}]   ;;  %s3405_s5 = inlined_call_operand.hbm [shape: f32[64,256], index: 5, kind: input, shape index: {}]   ;;  %s3406_s6 = inlined_call_operand.vmem [shape: f32[1,512], index: 6, kind: input, shape index: {}]   ;;  %s3407_s7 = inlined_call_operand.vmem [shape: f32[1,64], index: 7, kind: input, shape index: {}]   ;;  %s3408_s8 = inlined_call_operand.<no memory space> [shape: f32[1,1], index: 8, kind: input, shape index: {}]   ;;  %s3409_s9 = inlined_call_operand.vmem [shape: f32[2,1], index: 9, kind: output, shape index: {}]  }
   0x1   :  { %v14_v0 = vstv %s3408_s8 }
   0x2   :  { %15 = vst [vmem:[#allocation4] sm:$0x1] %v14_v0 }
   0x3   :  { %16 = vsyncpa [#allocation6], 0 }
   0x4   :  { %17 = vsyncpa [#allocation8], 0  ;;  %s2976_s11 = smov [#allocation7]   ;;  %s2906_s15 = scalar_lea.hbm %s3404_s4, 4096 }
   0x5   :  { %s41_s12 = sshll.u32 %s2976_s11, 4  ;;  %p2907_p0 = scmp.ne.s32.totalorder %s3404_s4, %s2906_s15  ;;  %s42_s12 = int_to_ptr.vmem [resolvable:$true] %s41_s12 }
   0x6   :  { %p2910_p1 = scmp.lt.u32.totalorder %s2906_s15, %s3404_s4 }
   0x8   :  { %p2912_p2 = pnand %p2910_p1, %p2907_p0 }
   0xa   :  { %2915 = shalt.err (!%p2912_p2)
}
   0xb   :  { %s2916_s8 = scalar_lea.vmem %s42_s12, 4096  ;;  %p2921_p4 = scmp.lt.s32.totalorder %s42_s12, %s42_s12 }
   0xc   :  { %p2917_p3 = scmp.ne.s32.totalorder %s42_s12, %s2916_s8  ;;  %p2922_p5 = scmp.lt.s32.totalorder %s2916_s8, %s2916_s8 }
   0xe   :  { %p2923_p6 = por %p2922_p5, %p2921_p4 }
  0x10   :  { %p2924_p7 = pnand %p2923_p6, %p2917_p3 }
  0x12   :  { %2927 = shalt.err (!%p2924_p7)
}
  0x13   :  { %s2977_s20 = smov 512   ;;  %s2978_s21 = smov 32  }
  0x14   :  { %47 = dma.hbm_to_vmem [thread:$0]  %s3404_s4, 4096, %s42_s12, [#allocation8], %s2977_s20, %s2977_s20, %s2978_s21  }
  0x15   :  { %s2979_s24 = smov [#allocation5]   ;;  %s2928_s28 = scalar_lea.hbm %s3402_s2, 2048 }
  0x16   :  { %s27_s25 = sshll.u32 %s2979_s24, 4  ;;  %p2929_p8 = scmp.ne.s32.totalorder %s3402_s2, %s2928_s28  ;;  %s28_s25 = int_to_ptr.vmem [resolvable:$true] %s27_s25 }
  0x17   :  { %p2932_p9 = scmp.lt.u32.totalorder %s2928_s28, %s3402_s2 }
  0x19   :  { %p2934_p10 = pnand %p2932_p9, %p2929_p8 }
  0x1b   :  { %2937 = shalt.err (!%p2934_p10)
}
  0x1c   :  { %s2938_s13 = scalar_lea.vmem %s28_s25, 2048  ;;  %p2943_p12 = scmp.lt.s32.totalorder %s28_s25, %s28_s25 }
  0x1d   :  { %p2939_p11 = scmp.ne.s32.totalorder %s28_s25, %s2938_s13  ;;  %p2944_p13 = scmp.lt.s32.totalorder %s2938_s13, %s2938_s13 }
  0x1f   :  { %p2945_p0 = por %p2944_p13, %p2943_p12 }
  0x21   :  { %p2946_p1 = pnand %p2945_p0, %p2939_p11 }
  0x23   :  { %2949 = shalt.err (!%p2946_p1)
}
  0x24   :  { %s2980_s4 = smov 256   ;;  %s2981_s12 = smov 16  }
  0x25   :  { %33 = dma.hbm_to_vmem [thread:$0]  %s3402_s2, 2048, %s28_s25, [#allocation6], %s2980_s4, %s2980_s4, %s2981_s12  }
  0x26   :  { %s2982_s16 = smov [#allocation9]   ;;  %s2950_s8 = scalar_lea.hbm %s3405_s5, 2048 }
  0x27   :  { %s53_s17 = sshll.u32 %s2982_s16, 4  ;;  %p2951_p2 = scmp.ne.s32.totalorder %s3405_s5, %s2950_s8  ;;  %s54_s17 = int_to_ptr.vmem [resolvable:$true] %s53_s17 }
  0x28   :  { %p2954_p3 = scmp.lt.u32.totalorder %s2950_s8, %s3405_s5 }
  0x2a   :  { %p2956_p4 = pnand %p2954_p3, %p2951_p2 }
  0x2c   :  { %2959 = shalt.err (!%p2956_p4)
}
  0x2d   :  { %s2960_s24 = scalar_lea.vmem %s54_s17, 2048  ;;  %p2965_p6 = scmp.lt.s32.totalorder %s54_s17, %s54_s17 }
  0x2e   :  { %p2961_p5 = scmp.ne.s32.totalorder %s54_s17, %s2960_s24  ;;  %p2966_p7 = scmp.lt.s32.totalorder %s2960_s24, %s2960_s24 }
  0x30   :  { %p2967_p8 = por %p2966_p7, %p2965_p6 }
  0x32   :  { %p2968_p9 = pnand %p2967_p8, %p2961_p5 }
  0x34   :  { %2971 = shalt.err (!%p2968_p9)
}
  0x35   :  { %59 = dma.hbm_to_vmem [thread:$0]  %s3405_s5, 2048, %s54_s17, [#allocation8], %s2980_s4, %s2980_s4, %s2981_s12  }
  0x36   :  { %2972 = dma.done.wait [#allocation6], 2048  }
  0x37   :  { %2973 = vsyncadd [#allocation6], 4294965248 }
  0x38   :  { %2974 = dma.done.wait [#allocation8], 6144  }
  0x39   :  { %2975 = vsyncadd [#allocation8], 4294961152  ;;  %v2983_v1 = vmov 0.0   ;;  %v77_v2 = vld [vmem:[%s3401_s1] sm:$0xff]  ;;  %vm112_vm0 = vcmask 1043456   ;;  %v78_v3 = vld [vmem:[%s3401_s1 + $0x8] sm:$0xff]  ;;  %v81_v32 = vlaneseq }
  0x3a   :  { %185 = vmatprep.mubr.f32.mxu0 %v2983_v1  ;;  %262 = vmatprep.mubr.f32.mxu1 %v2983_v1  ;;  %v103_v4 = vcombine.high %v77_v2, %v77_v2  ;;  %v104_v5 = vcombine.high %v78_v3, %v78_v3  ;;  %v343_v6 = vld [vmem:[#allocation5 + $0x8] sm:$0xff]  ;;  %v345_v7 = vld [vmem:[#allocation5 + $0x18] sm:$0xff]  ;;  %v342_v8 = vld [vmem:[#allocation5] sm:$0xff]  ;;  %vm105_vm1 = vcmask 31744   ;;  %vm467_vm2 = vcmask 254976  }
  0x3b   :  { %v75_v9 = vld [vmem:[%s3400_s0] sm:$0xff]  ;;  %v3085_v10 = vpack.c.bf16 %v345_v7, %v343_v6  ;;  %v349_v14 = vld [vmem:[#allocation5 + $0x38] sm:$0xff]  ;;  %v346_v16 = vld [vmem:[#allocation5 + $0x20] sm:$0xff]  ;;  %v3144_v33 = vshrl.u32 %v81_v32, 7  ;;  %vm469_vm3 = vcmask 519426   ;;  %vm359_vm4 = vcmask 523264  }
  0x3c   :  { %v344_v11 = vld [vmem:[#allocation5 + $0x10] sm:$0xff]  ;;  %v347_v12 = vld [vmem:[#allocation5 + $0x28] sm:$0xff]  ;;  %2426 = vmatprep.subr.msk.mxu0 %vm112_vm0, %v103_v4  ;;  %2430 = vmatprep.subr.msk.mxu1 %vm112_vm0, %v104_v5  ;;  %v353_v19 = vld [vmem:[#allocation5 + $0x58] sm:$0xff]  ;;  %vm2406_vm5 = vcmask 517120   ;;  %vm2418_vm6 = vcmask 1024  }
  0x3d   :  { %v3089_v13 = vpack.c.bf16 %v344_v11, %v342_v8  ;;  %2427 = vmatpush1.msk.msra.mxu0 %vm112_vm0, %v77_v2  ;;  %2431 = vmatpush1.msk.msra.mxu1 %vm112_vm0, %v78_v3  ;;  %v3093_v15 = vpack.c.bf16 %v349_v14, %v347_v12  ;;  %v348_v17 = vld [vmem:[#allocation5 + $0x30] sm:$0xff]  ;;  %v351_v18 = vld [vmem:[#allocation5 + $0x48] sm:$0xff]  ;;  %v350_v23 = vld [vmem:[#allocation5 + $0x40] sm:$0xff]  ;;  %v83_v34 = vsub.s32 0, %v3144_v33  ;;  %v91_v35 = vsub.s32 2, %v3144_v33 }
  0x3e   :  { %2428 = vmatmul.mubr.msk.f32.vlgmr.msra.gmra.mrb[0].mxu0 %vm105_vm1, %v75_v9  ;;  %2432 = vmatmul.mubr.msk.f32.vlgmr.msra.gmra.mrb[0].mxu1 %vm105_vm1, %v75_v9  ;;  %v76_v20 = vld [vmem:[%s3400_s0 + $0x8] sm:$0xff]  ;;  %v3104_v21 = vpack.c.bf16 %v348_v17, %v346_v16  ;;  %v3107_v22 = vpack.c.bf16 %v353_v19, %v351_v18  ;;  %v355_v25 = vld [vmem:[#allocation5 + $0x68] sm:$0xff]  ;;  %v354_v29 = vld [vmem:[#allocation5 + $0x60] sm:$0xff]  ;;  %v87_v37 = vsub.s32 1, %v3144_v33  ;;  %v95_v38 = vsub.s32 3, %v3144_v33 }
  0x3f   :  { %2480 = vmatprep.subr.bf16.mxu0 %v3085_v10  ;;  %191 = vmatprep.mubr.f32.mxu0 %v2983_v1  ;;  %v352_v24 = vld [vmem:[#allocation5 + $0x50] sm:$0xff]  ;;  %v357_v26 = vld [vmem:[#allocation5 + $0x78] sm:$0xff] }
  0x40   :  { %2482 = vmatpush1.bf16.msra.mxu0 %v3089_v13  ;;  %268 = vmatprep.mubr.f32.mxu1 %v2983_v1  ;;  %v3115_v27 = vpack.c.bf16 %v352_v24, %v350_v23  ;;  %v3119_v28 = vpack.c.bf16 %v357_v26, %v355_v25  ;;  %v356_v30 = vld [vmem:[#allocation5 + $0x70] sm:$0xff] }
  0x41   :  { %2484 = vmatprep.subr.bf16.mxu0 %v3093_v15  ;;  %2496 = vmatprep.subr.bf16.mxu1 %v3085_v10  ;;  %v3124_v31 = vpack.c.bf16 %v356_v30, %v354_v29  ;;  %v79_v36 = vld [vmem:[%s3403_s3] sm:$0xf]  ;;  %s2984_s3 = smov 64  }
  0x42   :  { %2429 = vmatmul.mubr.msk.f32.gmra.mrb[2].mxu0 %vm105_vm1, %v76_v20  ;;  %2433 = vmatmul.mubr.msk.f32.gmra.mrb[2].mxu1 %vm105_vm1, %v76_v20  ;;  %v84_v39 = vrot.slane %v79_v36, %v83_v34  ;;  %v92_v40 = vrot.slane %v79_v36, %v91_v35  ;;  %v88_v41 = vrot.slane %v79_v36, %v87_v37 }
  0x43   :  { %427 = vmatprep.mubr.f32.mxu0 %v2983_v1  ;;  %2498 = vmatpush1.bf16.msra.mxu1 %v3089_v13  ;;  %v96_v42 = vrot.slane %v79_v36, %v95_v38 }
  0x44   :  { %2486 = vmatpush1.bf16.msra.mxu0 %v3104_v21  ;;  %2500 = vmatprep.subr.bf16.mxu1 %v3093_v15 }
  0x45   :  { %2488 = vmatprep.subr.bf16.mxu0 %v3107_v22  ;;  %539 = vmatprep.mubr.f32.mxu1 %v2983_v1 }
  0x47   :  { %2502 = vmatpush1.bf16.msra.mxu1 %v3104_v21 }
  0x48   :  { %2490 = vmatpush1.bf16.msra.mxu0 %v3115_v27  ;;  %2504 = vmatprep.subr.bf16.mxu1 %v3107_v22 }
  0x49   :  { %2492 = vmatprep.subr.bf16.mxu0 %v3119_v28 }
  0x4b   :  { %2506 = vmatpush1.bf16.msra.mxu1 %v3115_v27 }
  0x4c   :  { %2494 = vmatpush1.bf16.msra.mxu0 %v3124_v31  ;;  %2508 = vmatprep.subr.bf16.mxu1 %v3119_v28 }
  0x4d   :  { %2512 = vmatprep.subr.bf16.mxu0 %v3085_v10 }
  0x4f   :  { %428 = vmatmul.mubr.f32.vlgmr.msra.gmra.mrb[4].mxu0 %v2983_v1  ;;  %2510 = vmatpush1.bf16.msra.mxu1 %v3124_v31 }
  0x50   :  { %2514 = vmatpush1.bf16.msra.mxu0 %v3089_v13  ;;  %649 = vmatprep.mubr.f32.mxu0 %v2983_v1 }
  0x51   :  { %2516 = vmatprep.subr.bf16.mxu0 %v3093_v15  ;;  %2528 = vmatprep.subr.bf16.mxu1 %v3085_v10 }
  0x54   :  { %2518 = vmatpush1.bf16.msra.mxu0 %v3104_v21 }
  0x55   :  { %2520 = vmatprep.subr.bf16.mxu0 %v3107_v22 }
  0x58   :  { %2522 = vmatpush1.bf16.msra.mxu0 %v3115_v27 }
  0x59   :  { %2524 = vmatprep.subr.bf16.mxu0 %v3119_v28 }
  0x5c   :  { %2526 = vmatpush1.bf16.msra.mxu0 %v3124_v31 }
  0x5d   :  { %2544 = vmatprep.subr.bf16.mxu0 %v3085_v10 }
 0x111   :  { %v187_v43 = vpop.f32.mrb[0].mxu0  ;;  %v264_v44 = vpop.f32.mrb[0].mxu1 }
 0x112   :  { %v188_v45 = vadd.f32 %v187_v43, %v84_v39  ;;  %v189_v46 = vpop.f32.mrb[1].mxu0  ;;  %v265_v47 = vadd.f32 %v264_v44, %v92_v40  ;;  %v266_v48 = vpop.f32.mrb[1].mxu1 }
 0x113   :  { %v190_v49 = vadd.f32 %v189_v46, %v88_v41  ;;  %v267_v50 = vadd.f32 %v266_v48, %v96_v42 }
 0x115   :  { %v277_v51 = vcombine.low %v188_v45, %v190_v49  ;;  %v295_v52 = vcombine.high %v188_v45, %v190_v49  ;;  %v282_v53 = vcombine.low %v265_v47, %v267_v50  ;;  %v299_v54 = vcombine.high %v265_v47, %v267_v50  ;;  %v193_v55 = vpop.f32.mrb[2].mxu0  ;;  %v270_v56 = vpop.f32.mrb[2].mxu1 }
 0x116   :  { %v194_v57 = vadd.f32 %v193_v55, %v84_v39  ;;  %v271_v58 = vadd.f32 %v270_v56, %v92_v40  ;;  %v195_v59 = vpop.f32.mrb[3].mxu0  ;;  %v272_v60 = vpop.f32.mrb[3].mxu1 }
 0x117   :  { %279 = vst [vmem:[#allocation3] sm:$0x33] %v277_v51  ;;  %v2434_v61 = vrot.slane %v277_v51, 10  ;;  %298 = vst [vmem:[#allocation3 + $0x10] sm:$0x33] %v295_v52  ;;  %v2435_v62 = vrot.slane %v295_v52, 10  ;;  %v196_v2 = vadd.f32 %v195_v59, %v88_v41  ;;  %v273_v3 = vadd.f32 %v272_v60, %v96_v42 }
 0x118   :  { %v283_v63 = vrot.slane %v282_v53, 6  ;;  %294 = vst [vmem:[#allocation3 + $0x30] sm:$0xcc] %v282_v53  ;;  %v300_v0 = vrot.slane %v299_v54, 6  ;;  %311 = vst [vmem:[#allocation3 + $0x20] sm:$0xcc] %v299_v54 }
 0x119   :  { %291 = vst [vmem:[#allocation3 + $0x8] sm:$0x33] %v2434_v61  ;;  %308 = vst [vmem:[#allocation3 + $0x18] sm:$0x33] %v2435_v62  ;;  %v314_v4 = vcombine.low %v194_v57, %v196_v2  ;;  %v329_v5 = vcombine.high %v194_v57, %v196_v2  ;;  %v319_v6 = vcombine.low %v271_v58, %v273_v3 }
 0x11a   :  { %286 = vst [vmem:[#allocation3 + $0x38] sm:$0xcc] %v283_v63  ;;  %303 = vst [vmem:[#allocation3 + $0x28] sm:$0xcc] %v300_v0  ;;  %v332_v7 = vcombine.high %v271_v58, %v273_v3 }
 0x11b   :  { %316 = vst [vmem:[#allocation3 + $0x20] sm:$0x33] %v314_v4  ;;  %v2436_v8 = vrot.slane %v314_v4, 10  ;;  %331 = vst [vmem:[#allocation3 + $0x30] sm:$0x33] %v329_v5  ;;  %v2437_v9 = vrot.slane %v329_v5, 10 }
 0x11c   :  { %v320_v11 = vrot.slane %v319_v6, 6  ;;  %328 = vst [vmem:[#allocation3 + $0x10] sm:$0xcc] %v319_v6  ;;  %v333_v12 = vrot.slane %v332_v7, 6  ;;  %341 = vst [vmem:[#allocation3] sm:$0xcc] %v332_v7 }
 0x11d   :  { %326 = vst [vmem:[#allocation3 + $0x28] sm:$0x33] %v2436_v8  ;;  %339 = vst [vmem:[#allocation3 + $0x38] sm:$0x33] %v2437_v9 }
 0x11e   :  { %322 = vst [vmem:[#allocation3 + $0x18] sm:$0xcc] %v320_v11  ;;  %335 = vst [vmem:[#allocation3 + $0x8] sm:$0xcc] %v333_v12 }
 0x122   :  { %v429_v14 = vpop.f32.mrb[4].mxu0 }
 0x123   :  { %v431_v16 = vpop.f32.mrb[5].mxu0  ;;  %v358_v18 = vld [vmem:[#allocation3] sm:$0xff]  ;;  %v581_v5 = vld [vmem:[#allocation3 + $0x10] sm:$0xff] }
 0x124   :  { %v436_v17 = vcombine.low %v429_v14, %v431_v16 }
 0x125   :  { %v471_v48 = vld [vmem:[#allocation3 + $0x8] sm:$0xff] }
 0x126   :  { %v438_v19 = vadd.f32 %v436_v17, %v358_v18 }
 0x128   :  { %v2438_v20 = vmul.f32 -1.442695, %v438_v19 }
 0x12a   :  { %2778 = vpow2.f32 %v2438_v20 }
 0x12b   :  { %2780 = vtanh.f32 %v438_v19 }
 0x134   :  { %v2779_v23 = vpop.eup %2778 }
 0x135   :  { %v442_v24 = vadd.f32 1.0, %v2779_v23  ;;  %v2781_v25 = vpop.eup %2780 }
 0x136   :  { %v448_v26 = vrot.slane %v2781_v25, 4 }
 0x137   :  { %2782 = vrcp.f32 %v442_v24 }
 0x141   :  { %v2783_v29 = vpop.eup %2782 }
 0x142   :  { %v450_v30 = vmul.f32 %v2783_v29, %v448_v26  ;;  %v446_v32 = vmul.f32 0.0, %v2783_v29 }
 0x144   :  { %452 = vrot.lane.b32.xlu0 %v450_v30, %s2984_s3 }
 0x148   :  { %458 = vrot.lane.b32.xlu0 %v2783_v29, %s2984_s3 }
 0x1b6   :  { %v453_v36 = vpop.permute.xlu0 %452 }
 0x1b7   :  { %v455_v39 = vadd.f32 %v453_v36, %v446_v32  ;;  %v691_v36 = vld [vmem:[#allocation3 + $0x18] sm:$0xff] }
 0x1b9   :  { %2784 = vtanh.f32 %v455_v39 }
 0x1ba   :  { %v459_v41 = vpop.permute.xlu0 %458 }
 0x1bb   :  { %v460_v42 = vrot.slane %v459_v41, 4 }
 0x1c3   :  { %v2785_v40 = vpop.eup %2784 }
 0x1c4   :  { %463 = vrot.lane.b32.xlu1 %v2785_v40, %s2984_s3 }
 0x236   :  { %v464_v43 = vpop.permute.xlu1 %463 }
 0x237   :  { %v466_v44 = vmul.f32 %v464_v43, %v460_v42 }
 0x239   :  { %468 = vst.msk [vmem:[#allocation2] sm:$0x3] %vm467_vm2, %v466_v44  ;;  %2439 = vmatmul.mubr.msk.f32.vlgmr.msra.gmra.mrb[4].mxu1 %vm359_vm4, %v466_v44 }
 0x23a   :  { %470 = vst.msk [vmem:[#allocation2 + $0xc] sm:$0xc] %vm469_vm3, %v466_v44  ;;  %2530 = vmatpush1.bf16.msra.mxu1 %v3089_v13  ;;  %759 = vmatprep.mubr.f32.mxu1 %v2983_v1 }
 0x23b   :  { %2532 = vmatprep.subr.bf16.mxu1 %v3093_v15 }
 0x23e   :  { %2534 = vmatpush1.bf16.msra.mxu1 %v3104_v21 }
 0x23f   :  { %2536 = vmatprep.subr.bf16.mxu1 %v3107_v22 }
 0x242   :  { %2538 = vmatpush1.bf16.msra.mxu1 %v3115_v27 }
 0x243   :  { %2540 = vmatprep.subr.bf16.mxu1 %v3119_v28 }
 0x246   :  { %2542 = vmatpush1.bf16.msra.mxu1 %v3124_v31 }
 0x247   :  { %2560 = vmatprep.subr.bf16.mxu1 %v3085_v10 }
 0x30c   :  { %v541_v45 = vpop.f32.mrb[4].mxu1 }
 0x30d   :  { %v543_v46 = vpop.f32.mrb[5].mxu1 }
 0x30e   :  { %v548_v47 = vcombine.low %v541_v45, %v543_v46 }
 0x310   :  { %v550_v49 = vadd.f32 %v548_v47, %v471_v48 }
 0x312   :  { %v2440_v50 = vmul.f32 -1.442695, %v550_v49 }
 0x314   :  { %2786 = vpow2.f32 %v2440_v50 }
 0x315   :  { %2788 = vtanh.f32 %v550_v49 }
 0x31e   :  { %v2787_v51 = vpop.eup %2786 }
 0x31f   :  { %v554_v52 = vadd.f32 1.0, %v2787_v51  ;;  %v2789_v53 = vpop.eup %2788 }
 0x320   :  { %v560_v54 = vrot.slane %v2789_v53, 4 }
 0x321   :  { %2790 = vrcp.f32 %v554_v52 }
 0x32b   :  { %v2791_v55 = vpop.eup %2790 }
 0x32c   :  { %570 = vrot.lane.b32.xlu0 %v2791_v55, %s2984_s3  ;;  %v562_v56 = vmul.f32 %v2791_v55, %v560_v54  ;;  %v558_v57 = vmul.f32 %v2791_v55, %v455_v39 }
 0x32e   :  { %564 = vrot.lane.b32.xlu1 %v562_v56, %s2984_s3 }
 0x39e   :  { %v571_v61 = vpop.permute.xlu0 %570 }
 0x39f   :  { %v572_v62 = vrot.slane %v571_v61, 4 }
 0x3a0   :  { %v565_v58 = vpop.permute.xlu1 %564 }
 0x3a1   :  { %v567_v59 = vadd.f32 %v565_v58, %v558_v57  ;;  %v801_v57 = vld [vmem:[#allocation3 + $0x20] sm:$0xff] }
 0x3a3   :  { %2792 = vtanh.f32 %v567_v59 }
 0x3ad   :  { %v2793_v60 = vpop.eup %2792 }
 0x3ae   :  { %575 = vrot.lane.b32.xlu1 %v2793_v60, %s2984_s3 }
 0x420   :  { %v576_v63 = vpop.permute.xlu1 %575 }
 0x421   :  { %v578_v0 = vmul.f32 %v576_v63, %v572_v62 }
 0x423   :  { %579 = vst.msk [vmem:[#allocation2 + $0x2] sm:$0x3] %vm467_vm2, %v578_v0  ;;  %2441 = vmatmul.mubr.msk.f32.vlgmr.msra.gmra.mrb[6].mxu0 %vm359_vm4, %v578_v0 }
 0x424   :  { %580 = vst.msk [vmem:[#allocation2 + $0xa] sm:$0xc] %vm469_vm3, %v578_v0  ;;  %2546 = vmatpush1.bf16.msra.mxu0 %v3089_v13  ;;  %869 = vmatprep.mubr.f32.mxu0 %v2983_v1 }
 0x425   :  { %2548 = vmatprep.subr.bf16.mxu0 %v3093_v15 }
 0x428   :  { %2550 = vmatpush1.bf16.msra.mxu0 %v3104_v21 }
 0x429   :  { %2552 = vmatprep.subr.bf16.mxu0 %v3107_v22 }
 0x42c   :  { %2554 = vmatpush1.bf16.msra.mxu0 %v3115_v27 }
 0x42d   :  { %2556 = vmatprep.subr.bf16.mxu0 %v3119_v28 }
 0x430   :  { %2558 = vmatpush1.bf16.msra.mxu0 %v3124_v31 }
 0x431   :  { %2576 = vmatprep.subr.bf16.mxu0 %v3085_v10 }
 0x4f6   :  { %v651_v2 = vpop.f32.mrb[6].mxu0 }
 0x4f7   :  { %v653_v3 = vpop.f32.mrb[7].mxu0 }
 0x4f8   :  { %v658_v4 = vcombine.low %v651_v2, %v653_v3 }
 0x4fa   :  { %v660_v6 = vadd.f32 %v658_v4, %v581_v5 }
 0x4fc   :  { %v2442_v7 = vmul.f32 -1.442695, %v660_v6 }
 0x4fe   :  { %2794 = vpow2.f32 %v2442_v7 }
 0x4ff   :  { %2796 = vtanh.f32 %v660_v6 }
 0x508   :  { %v2795_v8 = vpop.eup %2794 }
 0x509   :  { %v664_v9 = vadd.f32 1.0, %v2795_v8  ;;  %v2797_v11 = vpop.eup %2796 }
 0x50a   :  { %v670_v12 = vrot.slane %v2797_v11, 4 }
 0x50b   :  { %2798 = vrcp.f32 %v664_v9 }
 0x515   :  { %v2799_v14 = vpop.eup %2798 }
 0x516   :  { %680 = vrot.lane.b32.xlu1 %v2799_v14, %s2984_s3  ;;  %v672_v16 = vmul.f32 %v2799_v14, %v670_v12  ;;  %v668_v17 = vmul.f32 %v2799_v14, %v567_v59 }
 0x518   :  { %674 = vrot.lane.b32.xlu0 %v672_v16, %s2984_s3 }
 0x588   :  { %v681_v23 = vpop.permute.xlu1 %680 }
 0x589   :  { %v682_v24 = vrot.slane %v681_v23, 4 }
 0x58a   :  { %v675_v18 = vpop.permute.xlu0 %674 }
 0x58b   :  { %v677_v19 = vadd.f32 %v675_v18, %v668_v17  ;;  %v911_v17 = vld [vmem:[#allocation3 + $0x28] sm:$0xff] }
 0x58d   :  { %2800 = vtanh.f32 %v677_v19 }
 0x597   :  { %v2801_v20 = vpop.eup %2800 }
 0x598   :  { %685 = vrot.lane.b32.xlu0 %v2801_v20, %s2984_s3 }
 0x60a   :  { %v686_v25 = vpop.permute.xlu0 %685 }
 0x60b   :  { %v688_v26 = vmul.f32 %v686_v25, %v682_v24 }
 0x60d   :  { %689 = vst.msk [vmem:[#allocation2 + $0x4] sm:$0x3] %vm467_vm2, %v688_v26  ;;  %2443 = vmatmul.mubr.msk.f32.vlgmr.msra.gmra.mrb[6].mxu1 %vm359_vm4, %v688_v26 }
 0x60e   :  { %690 = vst.msk [vmem:[#allocation2 + $0x8] sm:$0xc] %vm469_vm3, %v688_v26  ;;  %2562 = vmatpush1.bf16.msra.mxu1 %v3089_v13  ;;  %979 = vmatprep.mubr.f32.mxu1 %v2983_v1 }
 0x60f   :  { %2564 = vmatprep.subr.bf16.mxu1 %v3093_v15 }
 0x612   :  { %2566 = vmatpush1.bf16.msra.mxu1 %v3104_v21 }
 0x613   :  { %2568 = vmatprep.subr.bf16.mxu1 %v3107_v22 }
 0x616   :  { %2570 = vmatpush1.bf16.msra.mxu1 %v3115_v27 }
 0x617   :  { %2572 = vmatprep.subr.bf16.mxu1 %v3119_v28 }
 0x61a   :  { %2574 = vmatpush1.bf16.msra.mxu1 %v3124_v31 }
 0x61b   :  { %2592 = vmatprep.subr.bf16.mxu1 %v3085_v10 }
 0x6e0   :  { %v761_v29 = vpop.f32.mrb[6].mxu1 }
 0x6e1   :  { %v763_v30 = vpop.f32.mrb[7].mxu1 }
 0x6e2   :  { %v768_v32 = vcombine.low %v761_v29, %v763_v30 }
 0x6e4   :  { %v770_v39 = vadd.f32 %v768_v32, %v691_v36 }
 0x6e6   :  { %v2444_v40 = vmul.f32 -1.442695, %v770_v39 }
 0x6e8   :  { %2802 = vpow2.f32 %v2444_v40  ;;  %v1021_v40 = vld [vmem:[#allocation3 + $0x30] sm:$0xff] }
 0x6e9   :  { %2804 = vtanh.f32 %v770_v39 }
 0x6f2   :  { %v2803_v41 = vpop.eup %2802 }
 0x6f3   :  { %v774_v42 = vadd.f32 1.0, %v2803_v41  ;;  %v2805_v43 = vpop.eup %2804 }
 0x6f4   :  { %v780_v44 = vrot.slane %v2805_v43, 4 }
 0x6f5   :  { %2806 = vrcp.f32 %v774_v42 }
 0x6ff   :  { %v2807_v45 = vpop.eup %2806 }
 0x700   :  { %790 = vrot.lane.b32.xlu0 %v2807_v45, %s2984_s3  ;;  %v782_v46 = vmul.f32 %v2807_v45, %v780_v44  ;;  %v778_v10 = vmul.f32 %v2807_v45, %v677_v19 }
 0x702   :  { %784 = vrot.lane.b32.xlu1 %v782_v46, %s2984_s3 }
 0x772   :  { %v791_v50 = vpop.permute.xlu0 %790 }
 0x773   :  { %v792_v51 = vrot.slane %v791_v50, 4 }
 0x774   :  { %v785_v47 = vpop.permute.xlu1 %784 }
 0x775   :  { %v787_v48 = vadd.f32 %v785_v47, %v778_v10 }
 0x777   :  { %2808 = vtanh.f32 %v787_v48 }
 0x781   :  { %v2809_v49 = vpop.eup %2808 }
 0x782   :  { %795 = vrot.lane.b32.xlu1 %v2809_v49, %s2984_s3 }
 0x7f4   :  { %v796_v52 = vpop.permute.xlu1 %795 }
 0x7f5   :  { %v798_v53 = vmul.f32 %v796_v52, %v792_v51 }
 0x7f7   :  { %799 = vst.msk [vmem:[#allocation2 + $0x6] sm:$0x3] %vm467_vm2, %v798_v53  ;;  %2445 = vmatmul.mubr.msk.f32.vlgmr.msra.gmra.mrb[8].mxu0 %vm359_vm4, %v798_v53 }
 0x7f8   :  { %800 = vst.msk [vmem:[#allocation2 + $0x6] sm:$0xc] %vm469_vm3, %v798_v53  ;;  %2578 = vmatpush1.bf16.msra.mxu0 %v3089_v13  ;;  %1089 = vmatprep.mubr.f32.mxu0 %v2983_v1 }
 0x7f9   :  { %2580 = vmatprep.subr.bf16.mxu0 %v3093_v15 }
 0x7fc   :  { %2582 = vmatpush1.bf16.msra.mxu0 %v3104_v21 }
 0x7fd   :  { %2584 = vmatprep.subr.bf16.mxu0 %v3107_v22 }
 0x800   :  { %2586 = vmatpush1.bf16.msra.mxu0 %v3115_v27 }
 0x801   :  { %2588 = vmatprep.subr.bf16.mxu0 %v3119_v28 }
 0x804   :  { %2590 = vmatpush1.bf16.msra.mxu0 %v3124_v31 }
 0x8ca   :  { %v871_v54 = vpop.f32.mrb[8].mxu0 }
 0x8cb   :  { %v873_v55 = vpop.f32.mrb[9].mxu0 }
 0x8cc   :  { %v878_v56 = vcombine.low %v871_v54, %v873_v55 }
 0x8ce   :  { %v880_v58 = vadd.f32 %v878_v56, %v801_v57 }
 0x8d0   :  { %v2446_v59 = vmul.f32 -1.442695, %v880_v58 }
 0x8d2   :  { %2810 = vpow2.f32 %v2446_v59  ;;  %v1131_v59 = vld [vmem:[#allocation3 + $0x38] sm:$0xff] }
 0x8d3   :  { %2812 = vtanh.f32 %v880_v58 }
 0x8dc   :  { %v2811_v60 = vpop.eup %2810 }
 0x8dd   :  { %v884_v61 = vadd.f32 1.0, %v2811_v60  ;;  %v2813_v62 = vpop.eup %2812 }
 0x8de   :  { %v890_v63 = vrot.slane %v2813_v62, 4 }
 0x8df   :  { %2814 = vrcp.f32 %v884_v61 }
 0x8e9   :  { %v2815_v0 = vpop.eup %2814 }
 0x8ea   :  { %900 = vrot.lane.b32.xlu1 %v2815_v0, %s2984_s3  ;;  %v892_v2 = vmul.f32 %v2815_v0, %v890_v63  ;;  %v888_v3 = vmul.f32 %v2815_v0, %v787_v48 }
 0x8ec   :  { %894 = vrot.lane.b32.xlu0 %v892_v2, %s2984_s3 }
 0x95c   :  { %v901_v7 = vpop.permute.xlu1 %900 }
 0x95d   :  { %v902_v8 = vrot.slane %v901_v7, 4  ;;  %v1243_v7 = vld [vmem:[#allocation7] sm:$0xff] }
 0x95e   :  { %v895_v4 = vpop.permute.xlu0 %894 }
 0x95f   :  { %v897_v5 = vadd.f32 %v895_v4, %v888_v3 }
 0x961   :  { %2816 = vtanh.f32 %v897_v5 }
 0x96b   :  { %v2817_v6 = vpop.eup %2816 }
 0x96c   :  { %905 = vrot.lane.b32.xlu0 %v2817_v6, %s2984_s3  ;;  %v1248_v6 = vld [vmem:[#allocation7 + $0x28] sm:$0xff] }
 0x9de   :  { %v906_v9 = vpop.permute.xlu0 %905 }
 0x9df   :  { %v908_v11 = vmul.f32 %v906_v9, %v902_v8  ;;  %v1247_v9 = vld [vmem:[#allocation7 + $0x20] sm:$0xff] }
 0x9e1   :  { %909 = vst.msk [vmem:[#allocation2 + $0x8] sm:$0x3] %vm467_vm2, %v908_v11  ;;  %2447 = vmatmul.mubr.msk.f32.vlgmr.msra.gmra.mrb[8].mxu1 %vm359_vm4, %v908_v11 }
 0x9e2   :  { %910 = vst.msk [vmem:[#allocation2 + $0x4] sm:$0xc] %vm469_vm3, %v908_v11  ;;  %2594 = vmatpush1.bf16.msra.mxu1 %v3089_v13  ;;  %1199 = vmatprep.mubr.f32.mxu1 %v2983_v1  ;;  %v1246_v11 = vld [vmem:[#allocation7 + $0x18] sm:$0xff] }
 0x9e3   :  { %2596 = vmatprep.subr.bf16.mxu1 %v3093_v15 }
 0x9e6   :  { %2598 = vmatpush1.bf16.msra.mxu1 %v3104_v21 }
 0x9e7   :  { %2600 = vmatprep.subr.bf16.mxu1 %v3107_v22 }
 0x9ea   :  { %2602 = vmatpush1.bf16.msra.mxu1 %v3115_v27 }
 0x9eb   :  { %2604 = vmatprep.subr.bf16.mxu1 %v3119_v28 }
 0x9ee   :  { %2606 = vmatpush1.bf16.msra.mxu1 %v3124_v31 }
 0xab4   :  { %v981_v12 = vpop.f32.mrb[8].mxu1 }
 0xab5   :  { %v983_v14 = vpop.f32.mrb[9].mxu1 }
 0xab6   :  { %v988_v16 = vcombine.low %v981_v12, %v983_v14  ;;  %v1250_v12 = vld [vmem:[#allocation7 + $0x38] sm:$0xff]  ;;  %v2609_v14 = vpack.c.bf16 %v1247_v9, %v1243_v7  ;;  %v1519_v7 = vld [vmem:[#allocation9 + $0x10] sm:$0xff] }
 0xab7   :  { %v1524_v9 = vld [vmem:[#allocation9 + $0x38] sm:$0xff] }
 0xab8   :  { %v990_v18 = vadd.f32 %v988_v16, %v911_v17  ;;  %v2623_v16 = vpack.c.bf16 %v1250_v12, %v1246_v11  ;;  %v1245_v17 = vld [vmem:[#allocation7 + $0x10] sm:$0xff] }
 0xaba   :  { %v2448_v13 = vmul.f32 -1.442695, %v990_v18  ;;  %2624 = vmatprep.subr.bf16.mxu1 %v2623_v16  ;;  %v1523_v16 = vld [vmem:[#allocation9 + $0x30] sm:$0xff] }
 0xabc   :  { %2818 = vpow2.f32 %v2448_v13  ;;  %v1252_v13 = vld [vmem:[#allocation7 + $0x48] sm:$0xff] }
 0xabd   :  { %2820 = vtanh.f32 %v990_v18  ;;  %v1249_v18 = vld [vmem:[#allocation7 + $0x30] sm:$0xff] }
 0xac6   :  { %v2819_v19 = vpop.eup %2818 }
 0xac7   :  { %v994_v15 = vadd.f32 1.0, %v2819_v19  ;;  %v2821_v21 = vpop.eup %2820  ;;  %v2625_v19 = vpack.c.bf16 %v1249_v18, %v1245_v17  ;;  %v1526_v18 = vld [vmem:[#allocation9 + $0x48] sm:$0xff] }
 0xac8   :  { %v1000_v20 = vrot.slane %v2821_v21, 4  ;;  %v1251_v21 = vld [vmem:[#allocation7 + $0x40] sm:$0xff] }
 0xac9   :  { %2822 = vrcp.f32 %v994_v15  ;;  %v1256_v15 = vld [vmem:[#allocation7 + $0x68] sm:$0xff] }
 0xad3   :  { %v2823_v22 = vpop.eup %2822 }
 0xad4   :  { %1010 = vrot.lane.b32.xlu0 %v2823_v22, %s2984_s3  ;;  %v1002_v27 = vmul.f32 %v2823_v22, %v1000_v20  ;;  %v998_v28 = vmul.f32 %v2823_v22, %v897_v5  ;;  %v1244_v5 = vld [vmem:[#allocation7 + $0x8] sm:$0xff]  ;;  %v1255_v20 = vld [vmem:[#allocation7 + $0x60] sm:$0xff]  ;;  %v2611_v22 = vpack.c.bf16 %v1256_v15, %v1252_v13  ;;  %v1528_v13 = vld [vmem:[#allocation9 + $0x58] sm:$0xff] }
 0xad5   :  { %v2607_v8 = vpack.c.bf16 %v1248_v6, %v1244_v5  ;;  %v1517_v6 = vld [vmem:[#allocation9] sm:$0xff]  ;;  %v3269_v15 = vpack.c.bf16 %v1528_v13, %v1526_v18 }
 0xad6   :  { %1004 = vrot.lane.b32.xlu1 %v1002_v27, %s2984_s3  ;;  %v2613_v27 = vpack.c.bf16 %v1255_v20, %v1251_v21  ;;  %v3257_v11 = vpack.c.bf16 %v1519_v7, %v1517_v6  ;;  %v1525_v21 = vld [vmem:[#allocation9 + $0x40] sm:$0xff]  ;;  %v1527_v20 = vld [vmem:[#allocation9 + $0x50] sm:$0xff] }
 0xad7   :  { %2608 = vmatprep.subr.bf16.mxu0 %v2607_v8  ;;  %v1522_v8 = vld [vmem:[#allocation9 + $0x28] sm:$0xff] }
 0xad8   :  { %v3259_v12 = vpack.c.bf16 %v1524_v9, %v1522_v8 }
 0xb46   :  { %v1011_v25 = vpop.permute.xlu0 %1010 }
 0xb47   :  { %v1012_v26 = vrot.slane %v1011_v25, 4  ;;  %v1257_v25 = vld [vmem:[#allocation7 + $0x70] sm:$0xff] }
 0xb48   :  { %v1005_v31 = vpop.permute.xlu1 %1004 }
 0xb49   :  { %v1007_v23 = vadd.f32 %v1005_v31, %v998_v28  ;;  %v1254_v28 = vld [vmem:[#allocation7 + $0x58] sm:$0xff] }
 0xb4a   :  { %v1258_v31 = vld [vmem:[#allocation7 + $0x78] sm:$0xff] }
 0xb4b   :  { %2824 = vtanh.f32 %v1007_v23 }
 0xb55   :  { %v2825_v24 = vpop.eup %2824 }
 0xb56   :  { %1015 = vrot.lane.b32.xlu1 %v2825_v24, %s2984_s3  ;;  %v2627_v24 = vpack.c.bf16 %v1258_v31, %v1254_v28  ;;  %v1532_v28 = vld [vmem:[#allocation9 + $0x78] sm:$0xff]  ;;  %v3275_v31 = vpack.c.bf16 %v1527_v20, %v1525_v21 }
 0xbc8   :  { %v1016_v29 = vpop.permute.xlu1 %1015 }
 0xbc9   :  { %v1018_v30 = vmul.f32 %v1016_v29, %v1012_v26 }
 0xbcb   :  { %1019 = vst.msk [vmem:[#allocation2 + $0xa] sm:$0x3] %vm467_vm2, %v1018_v30  ;;  %2449 = vmatmul.mubr.msk.f32.vlgmr.msra.gmra.mrb[10].mxu0 %vm359_vm4, %v1018_v30 }
 0xbcc   :  { %1020 = vst.msk [vmem:[#allocation2 + $0x2] sm:$0xc] %vm469_vm3, %v1018_v30  ;;  %1367 = vmatprep.mubr.f32.mxu0 %v2983_v1  ;;  %2610 = vmatpush1.bf16.msra.mxu0 %v2609_v14  ;;  %v1521_v14 = vld [vmem:[#allocation9 + $0x20] sm:$0xff] }
 0xbcd   :  { %2612 = vmatprep.subr.bf16.mxu0 %v2611_v22 }
 0xbd0   :  { %2614 = vmatpush1.bf16.msra.mxu0 %v2613_v27  ;;  %v1530_v27 = vld [vmem:[#allocation9 + $0x68] sm:$0xff] }
 0xc9e   :  { %v1091_v32 = vpop.f32.mrb[10].mxu0 }
 0xc9f   :  { %v1093_v36 = vpop.f32.mrb[11].mxu0 }
 0xca0   :  { %v1098_v39 = vcombine.low %v1091_v32, %v1093_v36  ;;  %v1260_v32 = vld [vmem:[#allocation7 + $0x88] sm:$0xff] }
 0xca1   :  { %v1264_v36 = vld [vmem:[#allocation7 + $0xa8] sm:$0xff] }
 0xca2   :  { %v1100_v41 = vadd.f32 %v1098_v39, %v1021_v40  ;;  %v2615_v40 = vpack.c.bf16 %v1264_v36, %v1260_v32 }
 0xca4   :  { %v2450_v42 = vmul.f32 -1.442695, %v1100_v41  ;;  %2616 = vmatprep.subr.bf16.mxu0 %v2615_v40 }
 0xca6   :  { %2826 = vpow2.f32 %v2450_v42  ;;  %v1263_v42 = vld [vmem:[#allocation7 + $0xa0] sm:$0xff] }
 0xca7   :  { %2828 = vtanh.f32 %v1100_v41  ;;  %v1259_v41 = vld [vmem:[#allocation7 + $0x80] sm:$0xff] }
 0xcb0   :  { %v2827_v43 = vpop.eup %2826 }
 0xcb1   :  { %v1104_v44 = vadd.f32 1.0, %v2827_v43  ;;  %v2829_v45 = vpop.eup %2828  ;;  %v1262_v43 = vld [vmem:[#allocation7 + $0x98] sm:$0xff] }
 0xcb2   :  { %v1110_v46 = vrot.slane %v2829_v45, 4  ;;  %v1266_v45 = vld [vmem:[#allocation7 + $0xb8] sm:$0xff] }
 0xcb3   :  { %2830 = vrcp.f32 %v1104_v44  ;;  %v2617_v44 = vpack.c.bf16 %v1263_v42, %v1259_v41 }
 0xcb5   :  { %2618 = vmatpush1.bf16.msra.mxu0 %v2617_v44 }
 0xcbd   :  { %v2831_v10 = vpop.eup %2830 }
 0xcbe   :  { %1120 = vrot.lane.b32.xlu1 %v2831_v10, %s2984_s3  ;;  %v1112_v47 = vmul.f32 %v2831_v10, %v1110_v46  ;;  %v1108_v48 = vmul.f32 %v2831_v10, %v1007_v23  ;;  %v1253_v23 = vld [vmem:[#allocation7 + $0x50] sm:$0xff] }
 0xcbf   :  { %v2629_v26 = vpack.c.bf16 %v1257_v25, %v1253_v23  ;;  %v1261_v46 = vld [vmem:[#allocation7 + $0x90] sm:$0xff]  ;;  %v3279_v23 = vpack.c.bf16 %v1532_v28, %v1530_v27 }
 0xcc0   :  { %1114 = vrot.lane.b32.xlu0 %v1112_v47, %s2984_s3  ;;  %v1265_v10 = vld [vmem:[#allocation7 + $0xb0] sm:$0xff]  ;;  %v2631_v47 = vpack.c.bf16 %v1266_v45, %v1262_v43 }
 0xcc1   :  { %v1531_v25 = vld [vmem:[#allocation9 + $0x70] sm:$0xff] }
 0xd30   :  { %v1121_v52 = vpop.permute.xlu1 %1120 }
 0xd31   :  { %v1122_v53 = vrot.slane %v1121_v52, 4  ;;  %v1267_v52 = vld [vmem:[#allocation7 + $0xc0] sm:$0xff] }
 0xd32   :  { %v1115_v49 = vpop.permute.xlu0 %1114 }
 0xd33   :  { %v1117_v50 = vadd.f32 %v1115_v49, %v1108_v48  ;;  %v2633_v48 = vpack.c.bf16 %v1265_v10, %v1261_v46  ;;  %v1268_v49 = vld [vmem:[#allocation7 + $0xc8] sm:$0xff] }
 0xd35   :  { %2832 = vtanh.f32 %v1117_v50 }
 0xd3f   :  { %v2833_v51 = vpop.eup %2832 }
 0xd40   :  { %1125 = vrot.lane.b32.xlu0 %v2833_v51, %s2984_s3  ;;  %v1272_v51 = vld [vmem:[#allocation7 + $0xe8] sm:$0xff] }
 0xdb2   :  { %v1126_v54 = vpop.permute.xlu0 %1125 }
 0xdb3   :  { %v1128_v55 = vmul.f32 %v1126_v54, %v1122_v53  ;;  %v1271_v53 = vld [vmem:[#allocation7 + $0xe0] sm:$0xff]  ;;  %v1270_v54 = vld [vmem:[#allocation7 + $0xd8] sm:$0xff] }
 0xdb5   :  { %1129 = vst.msk [vmem:[#allocation2 + $0xc] sm:$0x3] %vm467_vm2, %v1128_v55  ;;  %2451 = vmatmul.mubr.msk.f32.vlgmr.msra.gmra.mrb[10].mxu1 %vm359_vm4, %v1128_v55 }
 0xdb6   :  { %1130 = vst.msk [vmem:[#allocation2] sm:$0xc] %vm469_vm3, %v1128_v55  ;;  %1444 = vmatprep.mubr.f32.mxu1 %v2983_v1  ;;  %2626 = vmatpush1.bf16.msra.mxu1 %v2625_v19  ;;  %v1274_v55 = vld [vmem:[#allocation7 + $0xf8] sm:$0xff]  ;;  %v3265_v19 = vpack.c.bf16 %v1523_v16, %v1521_v14 }
 0xdb7   :  { %2628 = vmatprep.subr.bf16.mxu1 %v2627_v24  ;;  %v1529_v24 = vld [vmem:[#allocation9 + $0x60] sm:$0xff] }
 0xdba   :  { %2630 = vmatpush1.bf16.msra.mxu1 %v2629_v26  ;;  %v3286_v26 = vpack.c.bf16 %v1531_v25, %v1529_v24 }
 0xdbb   :  { %2632 = vmatprep.subr.bf16.mxu1 %v2631_v47 }
 0xdbe   :  { %2634 = vmatpush1.bf16.msra.mxu1 %v2633_v48 }
 0xe88   :  { %v1201_v56 = vpop.f32.mrb[10].mxu1 }
 0xe89   :  { %v1203_v57 = vpop.f32.mrb[11].mxu1 }
 0xe8a   :  { %v1208_v58 = vcombine.low %v1201_v56, %v1203_v57  ;;  %v2621_v56 = vpack.c.bf16 %v1271_v53, %v1267_v52  ;;  %v2635_v57 = vpack.c.bf16 %v1274_v55, %v1270_v54 }
 0xe8c   :  { %v1210_v60 = vadd.f32 %v1208_v58, %v1131_v59  ;;  %v1269_v58 = vld [vmem:[#allocation7 + $0xd0] sm:$0xff]  ;;  %2636 = vmatprep.subr.bf16.mxu1 %v2635_v57 }
 0xe8d   :  { %v1273_v59 = vld [vmem:[#allocation7 + $0xf0] sm:$0xff] }
 0xe8e   :  { %v2452_v61 = vmul.f32 -1.442695, %v1210_v60 }
 0xe90   :  { %2834 = vpow2.f32 %v2452_v61  ;;  %v2637_v61 = vpack.c.bf16 %v1273_v59, %v1269_v58 }
 0xe91   :  { %2836 = vtanh.f32 %v1210_v60  ;;  %v1518_v60 = vld [vmem:[#allocation9 + $0x8] sm:$0xff] }
 0xe92   :  { %2638 = vmatpush1.bf16.msra.mxu1 %v2637_v61 }
 0xe9a   :  { %v2835_v62 = vpop.eup %2834 }
 0xe9b   :  { %v1214_v63 = vadd.f32 1.0, %v2835_v62  ;;  %v2837_v0 = vpop.eup %2836  ;;  %v1520_v62 = vld [vmem:[#allocation9 + $0x18] sm:$0xff] }
 0xe9c   :  { %v1220_v2 = vrot.slane %v2837_v0, 4 }
 0xe9d   :  { %2838 = vrcp.f32 %v1214_v63  ;;  %v3250_v63 = vpack.c.bf16 %v1520_v62, %v1518_v60 }
 0xe9f   :  { %2656 = vmatprep.subr.bf16.mxu1 %v3250_v63 }
 0xea7   :  { %v2839_v3 = vpop.eup %2838 }
 0xea8   :  { %1230 = vrot.lane.b32.xlu0 %v2839_v3, %s2984_s3  ;;  %v1222_v4 = vmul.f32 %v2839_v3, %v1220_v2  ;;  %v1218_v29 = vmul.f32 %v2839_v3, %v1117_v50  ;;  %v2619_v50 = vpack.c.bf16 %v1272_v51, %v1268_v49 }
 0xeaa   :  { %1224 = vrot.lane.b32.xlu1 %v1222_v4, %s2984_s3  ;;  %2620 = vmatprep.subr.bf16.mxu0 %v2619_v50 }
 0xeab   :  { %2622 = vmatpush1.bf16.msra.mxu0 %v2621_v56 }
 0xeac   :  { %2640 = vmatprep.subr.bf16.mxu0 %v3250_v63 }
 0xf1a   :  { %v1231_v2 = vpop.permute.xlu0 %1230 }
 0xf1b   :  { %v1232_v3 = vrot.slane %v1231_v2, 4 }
 0xf1c   :  { %v1225_v30 = vpop.permute.xlu1 %1224 }
 0xf1d   :  { %v1227_v39 = vadd.f32 %v1225_v30, %v1218_v29  ;;  %v1275_v29 = vld [vmem:[%s3406_s6] sm:$0xf] }
 0xf1e   :  { %v1280_v30 = vrot.slane %v1275_v29, %v83_v34  ;;  %v1288_v32 = vrot.slane %v1275_v29, %v91_v35  ;;  %v1284_v36 = vrot.slane %v1275_v29, %v87_v37 }
 0xf1f   :  { %2840 = vtanh.f32 %v1227_v39  ;;  %v1292_v39 = vrot.slane %v1275_v29, %v95_v38 }
 0xf29   :  { %v2841_v0 = vpop.eup %2840 }
 0xf2a   :  { %1235 = vrot.lane.b32.xlu1 %v2841_v0, %s2984_s3 }
 0xf9c   :  { %v1236_v4 = vpop.permute.xlu1 %1235 }
 0xf9d   :  { %v1238_v5 = vmul.f32 %v1236_v4, %v1232_v3 }
 0xf9f   :  { %1239 = vst.msk [vmem:[#allocation2 + $0xe] sm:$0x3] %vm467_vm2, %v1238_v5 }
 0xfa0   :  { %1240 = vst.msk [vmem:[#allocation2 - $0x2] sm:$0xc] %vm469_vm3, %v1238_v5 }
 0xfa6   :  { %v1242_v22 = vld [vmem:[#allocation2 + $0x8] sm:$0xff] }
 0xfa7   :  { %v1241_v17 = vld [vmem:[#allocation2] sm:$0xff] }
 0xfa8   :  { %2453 = vmatmul.mubr.msk.f32.vlgmr.msra.gmra.mrb[12].mxu0 %vm359_vm4, %v1241_v17  ;;  %2455 = vmatmul.mubr.msk.f32.vlgmr.msra.gmra.mrb[12].mxu1 %vm359_vm4, %v1241_v17 }
 0xfa9   :  { %2642 = vmatpush1.bf16.msra.mxu0 %v3257_v11  ;;  %1373 = vmatprep.mubr.f32.mxu0 %v2983_v1 }
 0xfaa   :  { %1450 = vmatprep.mubr.f32.mxu1 %v2983_v1  ;;  %2644 = vmatprep.subr.bf16.mxu0 %v3259_v12 }
 0xfab   :  { %2658 = vmatpush1.bf16.msra.mxu1 %v3257_v11 }
 0xfac   :  { %2454 = vmatmul.mubr.msk.f32.gmra.mrb[14].mxu0 %vm359_vm4, %v1242_v22  ;;  %2456 = vmatmul.mubr.msk.f32.gmra.mrb[14].mxu1 %vm359_vm4, %v1242_v22 }
 0xfad   :  { %2646 = vmatpush1.bf16.msra.mxu0 %v3265_v19  ;;  %1598 = vmatprep.mubr.f32.mxu0 %v2983_v1 }
 0xfae   :  { %2648 = vmatprep.subr.bf16.mxu0 %v3269_v15  ;;  %2660 = vmatprep.subr.bf16.mxu1 %v3259_v12 }
 0xfaf   :  { %2662 = vmatpush1.bf16.msra.mxu1 %v3265_v19  ;;  %1706 = vmatprep.mubr.f32.mxu1 %v2983_v1 }
 0xfb0   :  { %2664 = vmatprep.subr.bf16.mxu1 %v3269_v15 }
 0xfb1   :  { %2650 = vmatpush1.bf16.msra.mxu0 %v3275_v31 }
 0xfb2   :  { %2652 = vmatprep.subr.bf16.mxu0 %v3279_v23 }
 0xfb3   :  { %2666 = vmatpush1.bf16.msra.mxu1 %v3275_v31 }
 0xfb4   :  { %2668 = vmatprep.subr.bf16.mxu1 %v3279_v23 }
 0xfb5   :  { %2654 = vmatpush1.bf16.msra.mxu0 %v3286_v26 }
 0xfb6   :  { %2672 = vmatprep.subr.bf16.mxu0 %v3250_v63 }
 0xfb7   :  { %2670 = vmatpush1.bf16.msra.mxu1 %v3286_v26 }
 0xfb8   :  { %1599 = vmatmul.mubr.f32.vlgmr.msra.gmra.mrb[16].mxu0 %v2983_v1  ;;  %2688 = vmatprep.subr.bf16.mxu1 %v3250_v63 }
 0xfb9   :  { %2674 = vmatpush1.bf16.msra.mxu0 %v3257_v11  ;;  %1814 = vmatprep.mubr.f32.mxu0 %v2983_v1 }
 0xfba   :  { %2676 = vmatprep.subr.bf16.mxu0 %v3259_v12 }
 0xfbd   :  { %2678 = vmatpush1.bf16.msra.mxu0 %v3265_v19 }
 0xfbe   :  { %2680 = vmatprep.subr.bf16.mxu0 %v3269_v15 }
 0xfc1   :  { %2682 = vmatpush1.bf16.msra.mxu0 %v3275_v31 }
 0xfc2   :  { %2684 = vmatprep.subr.bf16.mxu0 %v3279_v23 }
 0xfc5   :  { %2686 = vmatpush1.bf16.msra.mxu0 %v3286_v26 }
 0xfc6   :  { %2704 = vmatprep.subr.bf16.mxu0 %v3250_v63 }
0x107b   :  { %v1369_v40 = vpop.f32.mrb[12].mxu0  ;;  %v1446_v41 = vpop.f32.mrb[12].mxu1 }
0x107c   :  { %v1370_v42 = vadd.f32 %v1369_v40, %v1280_v30  ;;  %v1447_v43 = vadd.f32 %v1446_v41, %v1288_v32  ;;  %v1371_v44 = vpop.f32.mrb[13].mxu0  ;;  %v1448_v45 = vpop.f32.mrb[13].mxu1 }
0x107d   :  { %v1372_v46 = vadd.f32 %v1371_v44, %v1284_v36  ;;  %v1449_v10 = vadd.f32 %v1448_v45, %v1292_v39 }
0x107f   :  { %v1459_v47 = vcombine.low %v1370_v42, %v1372_v46  ;;  %v1474_v48 = vcombine.high %v1370_v42, %v1372_v46  ;;  %v1464_v34 = vcombine.low %v1447_v43, %v1449_v10  ;;  %v1477_v49 = vcombine.high %v1447_v43, %v1449_v10  ;;  %v1375_v51 = vpop.f32.mrb[14].mxu0  ;;  %v1452_v35 = vpop.f32.mrb[14].mxu1 }
0x1080   :  { %v1376_v52 = vadd.f32 %v1375_v51, %v1280_v30  ;;  %v1453_v50 = vadd.f32 %v1452_v35, %v1288_v32  ;;  %v1377_v37 = vpop.f32.mrb[15].mxu0  ;;  %v1454_v53 = vpop.f32.mrb[15].mxu1 }
0x1081   :  { %1461 = vst [vmem:[#allocation3] sm:$0x33] %v1459_v47  ;;  %v2457_v33 = vrot.slane %v1459_v47, 10  ;;  %1476 = vst [vmem:[#allocation3 + $0x10] sm:$0x33] %v1474_v48  ;;  %v2458_v38 = vrot.slane %v1474_v48, 10  ;;  %v1378_v56 = vadd.f32 %v1377_v37, %v1284_v36  ;;  %v1455_v57 = vadd.f32 %v1454_v53, %v1292_v39 }
0x1082   :  { %v1465_v54 = vrot.slane %v1464_v34, 6  ;;  %1473 = vst [vmem:[#allocation3 + $0x30] sm:$0xcc] %v1464_v34  ;;  %v1478_v55 = vrot.slane %v1477_v49, 6  ;;  %1486 = vst [vmem:[#allocation3 + $0x20] sm:$0xcc] %v1477_v49 }
0x1083   :  { %1471 = vst [vmem:[#allocation3 + $0x8] sm:$0x33] %v2457_v33  ;;  %1484 = vst [vmem:[#allocation3 + $0x18] sm:$0x33] %v2458_v38  ;;  %v1489_v58 = vcombine.low %v1376_v52, %v1378_v56  ;;  %v1504_v59 = vcombine.high %v1376_v52, %v1378_v56  ;;  %v1494_v60 = vcombine.low %v1453_v50, %v1455_v57 }
0x1084   :  { %1467 = vst [vmem:[#allocation3 + $0x38] sm:$0xcc] %v1465_v54  ;;  %1480 = vst [vmem:[#allocation3 + $0x28] sm:$0xcc] %v1478_v55  ;;  %v1507_v61 = vcombine.high %v1453_v50, %v1455_v57 }
0x1085   :  { %1491 = vst [vmem:[#allocation3 + $0x20] sm:$0x33] %v1489_v58  ;;  %v2459_v62 = vrot.slane %v1489_v58, 10  ;;  %1506 = vst [vmem:[#allocation3 + $0x30] sm:$0x33] %v1504_v59  ;;  %v2460_v0 = vrot.slane %v1504_v59, 10 }
0x1086   :  { %v1495_v2 = vrot.slane %v1494_v60, 6  ;;  %1503 = vst [vmem:[#allocation3 + $0x10] sm:$0xcc] %v1494_v60  ;;  %v1508_v3 = vrot.slane %v1507_v61, 6  ;;  %1516 = vst [vmem:[#allocation3] sm:$0xcc] %v1507_v61 }
0x1087   :  { %1501 = vst [vmem:[#allocation3 + $0x28] sm:$0x33] %v2459_v62  ;;  %1514 = vst [vmem:[#allocation3 + $0x38] sm:$0x33] %v2460_v0 }
0x1088   :  { %1497 = vst [vmem:[#allocation3 + $0x18] sm:$0xcc] %v1495_v2  ;;  %1510 = vst [vmem:[#allocation3 + $0x8] sm:$0xcc] %v1508_v3 }
0x108b   :  { %v1600_v4 = vpop.f32.mrb[16].mxu0 }
0x108c   :  { %v1602_v5 = vpop.f32.mrb[17].mxu0 }
0x108d   :  { %v1533_v6 = vld [vmem:[#allocation3] sm:$0xff]  ;;  %v1607_v7 = vcombine.low %v1600_v4, %v1602_v5  ;;  %v1746_v54 = vld [vmem:[#allocation3 + $0x10] sm:$0xff] }
0x108f   :  { %v1609_v8 = vadd.f32 %v1607_v7, %v1533_v6  ;;  %v1638_v40 = vld [vmem:[#allocation3 + $0x8] sm:$0xff] }
0x1091   :  { %v2461_v9 = vmul.f32 -1.442695, %v1609_v8 }
0x1093   :  { %2842 = vpow2.f32 %v2461_v9 }
0x1094   :  { %2844 = vtanh.f32 %v1609_v8 }
0x109d   :  { %v2843_v14 = vpop.eup %2842 }
0x109e   :  { %v1613_v16 = vadd.f32 1.0, %v2843_v14  ;;  %v2845_v17 = vpop.eup %2844 }
0x109f   :  { %v1619_v18 = vrot.slane %v2845_v17, 4  ;;  %v1854_v17 = vld [vmem:[#allocation3 + $0x18] sm:$0xff] }
0x10a0   :  { %2846 = vrcp.f32 %v1613_v16 }
0x10aa   :  { %v2847_v13 = vpop.eup %2846 }
0x10ab   :  { %1629 = vrot.lane.b32.xlu1 %v2847_v13, %s2984_s3  ;;  %v1621_v21 = vmul.f32 %v2847_v13, %v1619_v18  ;;  %v1617_v20 = vmul.f32 0.0, %v2847_v13 }
0x10ad   :  { %1623 = vrot.lane.b32.xlu0 %v1621_v21, %s2984_s3 }
0x111d   :  { %v1630_v24 = vpop.permute.xlu1 %1629 }
0x111e   :  { %v1631_v25 = vrot.slane %v1630_v24, 4 }
0x111f   :  { %v1624_v22 = vpop.permute.xlu0 %1623 }
0x1120   :  { %v1626_v27 = vadd.f32 %v1624_v22, %v1617_v20 }
0x1122   :  { %2848 = vtanh.f32 %v1626_v27 }
0x112c   :  { %v2849_v28 = vpop.eup %2848 }
0x112d   :  { %1634 = vrot.lane.b32.xlu0 %v2849_v28, %s2984_s3 }
0x119f   :  { %v1635_v29 = vpop.permute.xlu0 %1634 }
0x11a0   :  { %v3319_v30 = vmul.f32 %v1635_v29, %v1631_v25 }
0x11a2   :  { %2462 = vmatmul.mubr.msk.f32.vlgmr.msra.gmra.mrb[16].mxu1 %vm359_vm4, %v3319_v30 }
0x11a3   :  { %2690 = vmatpush1.bf16.msra.mxu1 %v3257_v11  ;;  %1922 = vmatprep.mubr.f32.mxu1 %v2983_v1 }
0x11a4   :  { %2692 = vmatprep.subr.bf16.mxu1 %v3259_v12 }
0x11a7   :  { %2694 = vmatpush1.bf16.msra.mxu1 %v3265_v19 }
0x11a8   :  { %2696 = vmatprep.subr.bf16.mxu1 %v3269_v15 }
0x11ab   :  { %2698 = vmatpush1.bf16.msra.mxu1 %v3275_v31 }
0x11ac   :  { %2700 = vmatprep.subr.bf16.mxu1 %v3279_v23 }
0x11af   :  { %2702 = vmatpush1.bf16.msra.mxu1 %v3286_v26 }
0x11b0   :  { %2720 = vmatprep.subr.bf16.mxu1 %v3250_v63 }
0x1275   :  { %v1708_v32 = vpop.f32.mrb[16].mxu1 }
0x1276   :  { %v1710_v36 = vpop.f32.mrb[17].mxu1 }
0x1277   :  { %v1715_v39 = vcombine.low %v1708_v32, %v1710_v36 }
0x1279   :  { %v1717_v41 = vadd.f32 %v1715_v39, %v1638_v40 }
0x127b   :  { %v2463_v42 = vmul.f32 -1.442695, %v1717_v41 }
0x127d   :  { %2850 = vpow2.f32 %v2463_v42 }
0x127e   :  { %2852 = vtanh.f32 %v1717_v41 }
0x1287   :  { %v2851_v43 = vpop.eup %2850 }
0x1288   :  { %v1721_v44 = vadd.f32 1.0, %v2851_v43  ;;  %v2853_v45 = vpop.eup %2852 }
0x1289   :  { %v1727_v46 = vrot.slane %v2853_v45, 4  ;;  %v1962_v45 = vld [vmem:[#allocation3 + $0x20] sm:$0xff] }
0x128a   :  { %2854 = vrcp.f32 %v1721_v44 }
0x1294   :  { %v2855_v10 = vpop.eup %2854 }
0x1295   :  { %1737 = vrot.lane.b32.xlu0 %v2855_v10, %s2984_s3  ;;  %v1729_v47 = vmul.f32 %v2855_v10, %v1727_v46  ;;  %v1725_v48 = vmul.f32 %v2855_v10, %v1626_v27 }
0x1297   :  { %1731 = vrot.lane.b32.xlu1 %v1729_v47, %s2984_s3 }
0x1307   :  { %v1738_v35 = vpop.permute.xlu0 %1737 }
0x1308   :  { %v1739_v52 = vrot.slane %v1738_v35, 4 }
0x1309   :  { %v1732_v34 = vpop.permute.xlu1 %1731 }
0x130a   :  { %v1734_v49 = vadd.f32 %v1732_v34, %v1725_v48 }
0x130c   :  { %2856 = vtanh.f32 %v1734_v49 }
0x1316   :  { %v2857_v51 = vpop.eup %2856 }
0x1317   :  { %1742 = vrot.lane.b32.xlu1 %v2857_v51, %s2984_s3 }
0x1389   :  { %v1743_v50 = vpop.permute.xlu1 %1742 }
0x138a   :  { %v1745_v37 = vmul.f32 %v1743_v50, %v1739_v52 }
0x138c   :  { %2464 = vmatmul.mubr.msk.f32.vlgmr.msra.gmra.mrb[18].mxu0 %vm359_vm4, %v1745_v37 }
0x138d   :  { %2706 = vmatpush1.bf16.msra.mxu0 %v3257_v11  ;;  %2030 = vmatprep.mubr.f32.mxu0 %v2983_v1 }
0x138e   :  { %2708 = vmatprep.subr.bf16.mxu0 %v3259_v12 }
0x1391   :  { %2710 = vmatpush1.bf16.msra.mxu0 %v3265_v19 }
0x1392   :  { %2712 = vmatprep.subr.bf16.mxu0 %v3269_v15 }
0x1395   :  { %2714 = vmatpush1.bf16.msra.mxu0 %v3275_v31 }
0x1396   :  { %2716 = vmatprep.subr.bf16.mxu0 %v3279_v23 }
0x1399   :  { %2718 = vmatpush1.bf16.msra.mxu0 %v3286_v26 }
0x139a   :  { %2736 = vmatprep.subr.bf16.mxu0 %v3250_v63 }
0x145f   :  { %v1816_v53 = vpop.f32.mrb[18].mxu0 }
0x1460   :  { %v1818_v33 = vpop.f32.mrb[19].mxu0 }
0x1461   :  { %v1823_v38 = vcombine.low %v1816_v53, %v1818_v33 }
0x1463   :  { %v1825_v55 = vadd.f32 %v1823_v38, %v1746_v54 }
0x1465   :  { %v2465_v56 = vmul.f32 -1.442695, %v1825_v55 }
0x1467   :  { %2858 = vpow2.f32 %v2465_v56 }
0x1468   :  { %2860 = vtanh.f32 %v1825_v55 }
0x1471   :  { %v2859_v57 = vpop.eup %2858 }
0x1472   :  { %v1829_v58 = vadd.f32 1.0, %v2859_v57  ;;  %v2861_v59 = vpop.eup %2860 }
0x1473   :  { %v1835_v60 = vrot.slane %v2861_v59, 4  ;;  %v2070_v59 = vld [vmem:[#allocation3 + $0x28] sm:$0xff] }
0x1474   :  { %2862 = vrcp.f32 %v1829_v58 }
0x147e   :  { %v2863_v61 = vpop.eup %2862 }
0x147f   :  { %1845 = vrot.lane.b32.xlu1 %v2863_v61, %s2984_s3  ;;  %v1837_v62 = vmul.f32 %v2863_v61, %v1835_v60  ;;  %v1833_v0 = vmul.f32 %v2863_v61, %v1734_v49 }
0x1481   :  { %1839 = vrot.lane.b32.xlu0 %v1837_v62, %s2984_s3 }
0x14f1   :  { %v1846_v5 = vpop.permute.xlu1 %1845 }
0x14f2   :  { %v1847_v6 = vrot.slane %v1846_v5, 4 }
0x14f3   :  { %v1840_v2 = vpop.permute.xlu0 %1839 }
0x14f4   :  { %v1842_v3 = vadd.f32 %v1840_v2, %v1833_v0 }
0x14f6   :  { %2864 = vtanh.f32 %v1842_v3 }
0x1500   :  { %v2865_v4 = vpop.eup %2864 }
0x1501   :  { %1850 = vrot.lane.b32.xlu0 %v2865_v4, %s2984_s3 }
0x1573   :  { %v1851_v7 = vpop.permute.xlu0 %1850 }
0x1574   :  { %v1853_v8 = vmul.f32 %v1851_v7, %v1847_v6 }
0x1576   :  { %2466 = vmatmul.mubr.msk.f32.vlgmr.msra.gmra.mrb[18].mxu1 %vm359_vm4, %v1853_v8 }
0x1577   :  { %2722 = vmatpush1.bf16.msra.mxu1 %v3257_v11  ;;  %2138 = vmatprep.mubr.f32.mxu1 %v2983_v1 }
0x1578   :  { %2724 = vmatprep.subr.bf16.mxu1 %v3259_v12 }
0x157b   :  { %2726 = vmatpush1.bf16.msra.mxu1 %v3265_v19 }
0x157c   :  { %2728 = vmatprep.subr.bf16.mxu1 %v3269_v15 }
0x157f   :  { %2730 = vmatpush1.bf16.msra.mxu1 %v3275_v31 }
0x1580   :  { %2732 = vmatprep.subr.bf16.mxu1 %v3279_v23 }
0x1583   :  { %2734 = vmatpush1.bf16.msra.mxu1 %v3286_v26 }
0x1584   :  { %2752 = vmatprep.subr.bf16.mxu1 %v3250_v63 }
0x1649   :  { %v1924_v9 = vpop.f32.mrb[18].mxu1 }
0x164a   :  { %v1926_v14 = vpop.f32.mrb[19].mxu1 }
0x164b   :  { %v1931_v16 = vcombine.low %v1924_v9, %v1926_v14  ;;  %v2178_v9 = vld [vmem:[#allocation3 + $0x30] sm:$0xff] }
0x164d   :  { %v1933_v18 = vadd.f32 %v1931_v16, %v1854_v17 }
0x164f   :  { %v2467_v13 = vmul.f32 -1.442695, %v1933_v18 }
0x1651   :  { %2866 = vpow2.f32 %v2467_v13 }
0x1652   :  { %2868 = vtanh.f32 %v1933_v18 }
0x165b   :  { %v2867_v21 = vpop.eup %2866 }
0x165c   :  { %v1937_v20 = vadd.f32 1.0, %v2867_v21  ;;  %v2869_v22 = vpop.eup %2868 }
0x165d   :  { %v1943_v27 = vrot.slane %v2869_v22, 4 }
0x165e   :  { %2870 = vrcp.f32 %v1937_v20 }
0x1668   :  { %v2871_v28 = vpop.eup %2870 }
0x1669   :  { %1953 = vrot.lane.b32.xlu0 %v2871_v28, %s2984_s3  ;;  %v1945_v24 = vmul.f32 %v2871_v28, %v1943_v27  ;;  %v1941_v63 = vmul.f32 %v2871_v28, %v1842_v3 }
0x166b   :  { %1947 = vrot.lane.b32.xlu1 %v1945_v24, %s2984_s3 }
0x16db   :  { %v1954_v36 = vpop.permute.xlu0 %1953 }
0x16dc   :  { %v1955_v39 = vrot.slane %v1954_v36, 4 }
0x16dd   :  { %v1948_v25 = vpop.permute.xlu1 %1947 }
0x16de   :  { %v1950_v29 = vadd.f32 %v1948_v25, %v1941_v63 }
0x16e0   :  { %2872 = vtanh.f32 %v1950_v29 }
0x16ea   :  { %v2873_v32 = vpop.eup %2872 }
0x16eb   :  { %1958 = vrot.lane.b32.xlu1 %v2873_v32, %s2984_s3 }
0x175d   :  { %v1959_v40 = vpop.permute.xlu1 %1958 }
0x175e   :  { %v1961_v41 = vmul.f32 %v1959_v40, %v1955_v39 }
0x1760   :  { %2468 = vmatmul.mubr.msk.f32.vlgmr.msra.gmra.mrb[20].mxu0 %vm359_vm4, %v1961_v41 }
0x1761   :  { %2738 = vmatpush1.bf16.msra.mxu0 %v3257_v11  ;;  %2246 = vmatprep.mubr.f32.mxu0 %v2983_v1 }
0x1762   :  { %2740 = vmatprep.subr.bf16.mxu0 %v3259_v12 }
0x1765   :  { %2742 = vmatpush1.bf16.msra.mxu0 %v3265_v19 }
0x1766   :  { %2744 = vmatprep.subr.bf16.mxu0 %v3269_v15 }
0x1769   :  { %2746 = vmatpush1.bf16.msra.mxu0 %v3275_v31 }
0x176a   :  { %2748 = vmatprep.subr.bf16.mxu0 %v3279_v23 }
0x176d   :  { %2750 = vmatpush1.bf16.msra.mxu0 %v3286_v26 }
0x1833   :  { %v2032_v42 = vpop.f32.mrb[20].mxu0 }
0x1834   :  { %v2034_v43 = vpop.f32.mrb[21].mxu0 }
0x1835   :  { %v2039_v44 = vcombine.low %v2032_v42, %v2034_v43  ;;  %v2286_v42 = vld [vmem:[#allocation3 + $0x38] sm:$0xff] }
0x1837   :  { %v2041_v46 = vadd.f32 %v2039_v44, %v1962_v45 }
0x1839   :  { %v2469_v10 = vmul.f32 -1.442695, %v2041_v46 }
0x183b   :  { %2874 = vpow2.f32 %v2469_v10 }
0x183c   :  { %2876 = vtanh.f32 %v2041_v46 }
0x1845   :  { %v2875_v47 = vpop.eup %2874 }
0x1846   :  { %v2045_v48 = vadd.f32 1.0, %v2875_v47  ;;  %v2877_v34 = vpop.eup %2876 }
0x1847   :  { %v2051_v49 = vrot.slane %v2877_v34, 4 }
0x1848   :  { %2878 = vrcp.f32 %v2045_v48 }
0x1852   :  { %v2879_v51 = vpop.eup %2878 }
0x1853   :  { %2061 = vrot.lane.b32.xlu1 %v2879_v51, %s2984_s3  ;;  %v2053_v35 = vmul.f32 %v2879_v51, %v2051_v49  ;;  %v2049_v52 = vmul.f32 %v2879_v51, %v1950_v29 }
0x1855   :  { %2055 = vrot.lane.b32.xlu0 %v2053_v35, %s2984_s3 }
0x18c5   :  { %v2062_v33 = vpop.permute.xlu1 %2061 }
0x18c6   :  { %v2063_v38 = vrot.slane %v2062_v33, 4  ;;  %v2476_v33 = vrot.slane %v3319_v30, 10 }
0x18c7   :  { %v2056_v50 = vpop.permute.xlu0 %2055 }
0x18c8   :  { %v2058_v37 = vadd.f32 %v2056_v50, %v2049_v52 }
0x18ca   :  { %2880 = vtanh.f32 %v2058_v37 }
0x18d4   :  { %v2881_v53 = vpop.eup %2880 }
0x18d5   :  { %2066 = vrot.lane.b32.xlu0 %v2881_v53, %s2984_s3 }
0x1947   :  { %v2067_v54 = vpop.permute.xlu0 %2066 }
0x1948   :  { %v2069_v55 = vmul.f32 %v2067_v54, %v2063_v38  ;;  %v2477_v54 = vld [vmem:[%s3407_s7] ss:$0 sm:$0xff] }
0x194a   :  { %2470 = vmatmul.mubr.msk.f32.vlgmr.msra.gmra.mrb[20].mxu1 %vm359_vm4, %v2069_v55 }
0x194b   :  { %2754 = vmatpush1.bf16.msra.mxu1 %v3257_v11  ;;  %2354 = vmatprep.mubr.f32.mxu1 %v2983_v1 }
0x194c   :  { %2756 = vmatprep.subr.bf16.mxu1 %v3259_v12 }
0x194f   :  { %2758 = vmatpush1.bf16.msra.mxu1 %v3265_v19 }
0x1950   :  { %2760 = vmatprep.subr.bf16.mxu1 %v3269_v15 }
0x1953   :  { %2762 = vmatpush1.bf16.msra.mxu1 %v3275_v31 }
0x1954   :  { %2764 = vmatprep.subr.bf16.mxu1 %v3279_v23 }
0x1957   :  { %2766 = vmatpush1.bf16.msra.mxu1 %v3286_v26 }
0x1a1d   :  { %v2140_v56 = vpop.f32.mrb[20].mxu1 }
0x1a1e   :  { %v2142_v57 = vpop.f32.mrb[21].mxu1 }
0x1a1f   :  { %v2147_v58 = vcombine.low %v2140_v56, %v2142_v57 }
0x1a21   :  { %v2149_v60 = vadd.f32 %v2147_v58, %v2070_v59  ;;  %v2478_v58 = vld [vmem:[#allocation4] ss:$0 sm:$0xff] }
0x1a23   :  { %v2471_v11 = vmul.f32 -1.442695, %v2149_v60 }
0x1a25   :  { %2882 = vpow2.f32 %v2471_v11 }
0x1a26   :  { %2884 = vtanh.f32 %v2149_v60 }
0x1a2f   :  { %v2883_v1 = vpop.eup %2882 }
0x1a30   :  { %v2153_v12 = vadd.f32 1.0, %v2883_v1  ;;  %v2885_v19 = vpop.eup %2884 }
0x1a31   :  { %v2159_v61 = vrot.slane %v2885_v19, 4 }
0x1a32   :  { %2886 = vrcp.f32 %v2153_v12 }
0x1a3c   :  { %v2887_v15 = vpop.eup %2886 }
0x1a3d   :  { %2169 = vrot.lane.b32.xlu0 %v2887_v15, %s2984_s3  ;;  %v2161_v31 = vmul.f32 %v2887_v15, %v2159_v61  ;;  %v2157_v23 = vmul.f32 %v2887_v15, %v2058_v37 }
0x1a3f   :  { %2163 = vrot.lane.b32.xlu1 %v2161_v31, %s2984_s3 }
0x1aaf   :  { %v2170_v2 = vpop.permute.xlu0 %2169 }
0x1ab0   :  { %v2171_v3 = vrot.slane %v2170_v2, 4 }
0x1ab1   :  { %v2164_v26 = vpop.permute.xlu1 %2163 }
0x1ab2   :  { %v2166_v62 = vadd.f32 %v2164_v26, %v2157_v23 }
0x1ab4   :  { %2888 = vtanh.f32 %v2166_v62 }
0x1abe   :  { %v2889_v0 = vpop.eup %2888 }
0x1abf   :  { %2174 = vrot.lane.b32.xlu1 %v2889_v0, %s2984_s3 }
0x1b31   :  { %v2175_v4 = vpop.permute.xlu1 %2174 }
0x1b32   :  { %v2177_v5 = vmul.f32 %v2175_v4, %v2171_v3 }
0x1b34   :  { %2472 = vmatmul.mubr.msk.f32.vlgmr.msra.gmra.mrb[22].mxu0 %vm359_vm4, %v2177_v5 }
0x1c07   :  { %v2248_v6 = vpop.f32.mrb[22].mxu0 }
0x1c08   :  { %v2250_v7 = vpop.f32.mrb[23].mxu0 }
0x1c09   :  { %v2255_v8 = vcombine.low %v2248_v6, %v2250_v7 }
0x1c0b   :  { %v2257_v14 = vadd.f32 %v2255_v8, %v2178_v9 }
0x1c0d   :  { %v2473_v16 = vmul.f32 -1.442695, %v2257_v14 }
0x1c0f   :  { %2890 = vpow2.f32 %v2473_v16 }
0x1c10   :  { %2892 = vtanh.f32 %v2257_v14 }
0x1c19   :  { %v2891_v17 = vpop.eup %2890 }
0x1c1a   :  { %v2261_v18 = vadd.f32 1.0, %v2891_v17  ;;  %v2893_v13 = vpop.eup %2892 }
0x1c1b   :  { %v2267_v21 = vrot.slane %v2893_v13, 4 }
0x1c1c   :  { %2894 = vrcp.f32 %v2261_v18 }
0x1c26   :  { %v2895_v20 = vpop.eup %2894 }
0x1c27   :  { %2277 = vrot.lane.b32.xlu1 %v2895_v20, %s2984_s3  ;;  %v2269_v22 = vmul.f32 %v2895_v20, %v2267_v21  ;;  %v2265_v27 = vmul.f32 %v2895_v20, %v2166_v62 }
0x1c29   :  { %2271 = vrot.lane.b32.xlu0 %v2269_v22, %s2984_s3 }
0x1c99   :  { %v2278_v25 = vpop.permute.xlu1 %2277 }
0x1c9a   :  { %v2279_v29 = vrot.slane %v2278_v25, 4 }
0x1c9b   :  { %v2272_v28 = vpop.permute.xlu0 %2271 }
0x1c9c   :  { %v2274_v24 = vadd.f32 %v2272_v28, %v2265_v27 }
0x1c9e   :  { %2896 = vtanh.f32 %v2274_v24 }
0x1ca8   :  { %v2897_v63 = vpop.eup %2896 }
0x1ca9   :  { %2282 = vrot.lane.b32.xlu0 %v2897_v63, %s2984_s3 }
0x1d1b   :  { %v2283_v32 = vpop.permute.xlu0 %2282 }
0x1d1c   :  { %v2285_v36 = vmul.f32 %v2283_v32, %v2279_v29 }
0x1d1e   :  { %2474 = vmatmul.mubr.msk.f32.vlgmr.msra.gmra.mrb[22].mxu1 %vm359_vm4, %v2285_v36 }
0x1df1   :  { %v2356_v39 = vpop.f32.mrb[22].mxu1 }
0x1df2   :  { %v2358_v40 = vpop.f32.mrb[23].mxu1 }
0x1df3   :  { %v2363_v41 = vcombine.low %v2356_v39, %v2358_v40 }
0x1df5   :  { %v2365_v43 = vadd.f32 %v2363_v41, %v2286_v42 }
0x1df7   :  { %v2475_v44 = vmul.f32 -1.442695, %v2365_v43 }
0x1df9   :  { %2898 = vpow2.f32 %v2475_v44 }
0x1dfa   :  { %2900 = vtanh.f32 %v2365_v43 }
0x1e03   :  { %v2899_v45 = vpop.eup %2898 }
0x1e04   :  { %v2369_v46 = vadd.f32 1.0, %v2899_v45  ;;  %v2901_v10 = vpop.eup %2900 }
0x1e05   :  { %v2375_v47 = vrot.slane %v2901_v10, 4 }
0x1e06   :  { %2902 = vrcp.f32 %v2369_v46 }
0x1e10   :  { %v2903_v48 = vpop.eup %2902 }
0x1e11   :  { %2385 = vrot.lane.b32.xlu0 %v2903_v48, %s2984_s3  ;;  %v2377_v34 = vmul.f32 %v2903_v48, %v2375_v47  ;;  %v2373_v49 = vmul.f32 %v2903_v48, %v2274_v24 }
0x1e13   :  { %2379 = vrot.lane.b32.xlu1 %v2377_v34, %s2984_s3 }
0x1e83   :  { %v2386_v50 = vpop.permute.xlu0 %2385 }
0x1e84   :  { %v2387_v37 = vrot.slane %v2386_v50, 4 }
0x1e85   :  { %v2380_v51 = vpop.permute.xlu1 %2379 }
0x1e86   :  { %v2382_v35 = vadd.f32 %v2380_v51, %v2373_v49 }
0x1e88   :  { %2904 = vtanh.f32 %v2382_v35 }
0x1e92   :  { %v2905_v52 = vpop.eup %2904 }
0x1e93   :  { %2390 = vrot.lane.b32.xlu1 %v2905_v52, %s2984_s3 }
0x1f05   :  { %v2391_v53 = vpop.permute.xlu1 %2390 }
0x1f06   :  { %v2393_v38 = vmul.f32 %v2391_v53, %v2387_v37 }
0x1f08   :  { %v2397_v55 = vadd.f32 %v2476_v33, %v2393_v38 }
0x1f0a   :  { %v2405_v56 = vmul.f32 %v2477_v54, %v2397_v55 }
0x1f0c   :  { %v2407_v57 = vsel %vm2406_vm5, %v2405_v56, 0.0 }
0x1f0d   :  { %2408 = vadd.xlane.f32.xlu0 %v2407_v57 }
0x1f9a   :  { %v2409_v59 = vpop.xlane.xlu0 %2408 }
0x1f9b   :  { %v2417_v60 = vadd.f32 %v2478_v58, %v2409_v59 }
0x1f9d   :  { %2419 = vst.msk [vmem:[%s3409_s9] sm:$0x3] %vm2418_vm6, %v2417_v60 }
0x1f9e   :  { %2424 = vsyncpa [#allocation6], 1 }
0x1f9f   :  { %2425 = vsyncpa [#allocation8], 1 }

</bundles_post_ra>
